<compile_context>
chip_gen: v7x
topology: tpu7x:2x2x1
jax: 0.10.0
libtpu: 0.0.40
codegen_flags: <defaults>
</compile_context>

<pallas_src>
import numpy as np
import jax
import jax.numpy as jnp
from jax import lax
from jax.experimental import pallas as pl
from jax.experimental.pallas import tpu as pltpu

MAX_DIAG_POINTS = 20


def _ph_kernel(x_ref, eps2_ref, interp_ref, diag_ref, betti_ref):
    # x_ref:      (1, BB, N, F)
    # eps2_ref:   (K, 1)            squared sampled filtration values
    # interp_ref: (K, NDIM*NF)      interpolation matrix, dim-1 columns zero
    # diag_ref:   (1, BB, NDIM*MAXP*2)   lane-dense flattened diagrams
    # betti_ref:  (1, BB, NDIM*NF)       lane-dense flattened Betti curves
    BB, N = x_ref.shape[1], x_ref.shape[2]
    MAXP = MAX_DIAG_POINTS
    DIAG_W = diag_ref.shape[2]
    INF = jnp.float32(1e30)

    x = x_ref[0].astype(jnp.float32)                          # (BB, N, F)

    # Squared pairwise distances via one batched Gram matmul; squared norms
    # computed directly (no Gram-diagonal masking).  No sqrt here: sqrt is
    # monotone, so MST edges, persistence ranks and threshold counts match.
    sq = jnp.sum(x * x, axis=-1)                              # (BB, N)
    gram = jnp.einsum('bnf,bmf->bnm', x, x,
                      preferred_element_type=jnp.float32)     # (BB, N, N)
    dist2 = jnp.maximum(sq[:, :, None] + sq[:, None, :] - 2.0 * gram, 0.0)

    lane_n = lax.broadcasted_iota(jnp.int32, (BB, N), 1)      # (BB, N)
    row3 = lax.broadcasted_iota(jnp.int32, (BB, N, 1), 1)     # (BB, N, 1)
    lane3 = lax.broadcasted_iota(jnp.int32, (BB, 1, N), 2)    # (BB, 1, N)

    # ---- Prim's MST (single linkage == H0 deaths), vectorized over BB ----
    key0 = dist2[:, 0, :]                                     # (BB, N)
    in_tree0 = lane_n == 0
    w0 = jnp.zeros((BB, N), jnp.float32)

    def body(step, carry):
        key, in_tree, w_acc = carry
        masked = jnp.where(in_tree, INF, key)                 # (BB, N)
        w2 = jnp.min(masked, axis=-1, keepdims=True)          # (BB, 1) edge wt^2
        cand = jnp.where(masked == w2, lane_n, jnp.int32(N))
        j = jnp.min(cand, axis=-1, keepdims=True)             # (BB, 1) new node
        in_tree = in_tree | (lane_n == j)
        w_acc = w_acc + jnp.where(lane_n == (step - 1), w2, 0.0)
        # incremental key maintenance: key = min(key, dist2 row of node j)
        d2j = jnp.min(jnp.where(row3 == j[:, :, None], dist2, INF), axis=1)
        key = jnp.minimum(key, d2j)
        return key, in_tree, w_acc

    _, _, wv = lax.fori_loop(1, N, body, (key0, in_tree0, w0), unroll=True)
    # wv[b, e] for e < N-1: squared MST edge weight e; lanes >= N-1 stay 0.
    validN = lane_n < (N - 1)

    # ---- H0 diagram: deaths sorted by persistence descending (birth == 0) ----
    w_sub = wv[:, :, None]                                    # (BB, N, 1)
    w_lan = wv[:, None, :]                                    # (BB, 1, N)
    valid_sub = row3 < (N - 1)
    greater = ((w_sub > w_lan) | ((w_sub == w_lan) & (row3 < lane3))) & valid_sub
    rank = jnp.sum(greater.astype(jnp.int32), axis=1)         # (BB, N)
    rank = jnp.where(validN, rank, jnp.int32(MAXP + N))

    slot3 = lax.broadcasted_iota(jnp.int32, (BB, MAXP, 1), 1)
    hit = slot3 == rank[:, None, :]                           # (BB, MAXP, N)
    deaths2 = jnp.sum(jnp.where(hit, w_lan, 0.0), axis=2)     # (BB, MAXP)
    deaths = jnp.sqrt(deaths2)                                # only MAXP sqrts

    # Lane-dense flattened diagram: dim-0 deaths land at odd lanes < 2*MAXP via
    # a tiny scatter matmul; births and the whole dim-1 block stay zero.
    p_io = lax.broadcasted_iota(jnp.int32, (MAXP, DIAG_W), 0)
    l_io = lax.broadcasted_iota(jnp.int32, (MAXP, DIAG_W), 1)
    scat = (l_io == 2 * p_io + 1).astype(jnp.float32)         # (MAXP, DIAG_W)
    diag_ref[0] = jnp.dot(deaths, scat, preferred_element_type=jnp.float32)
    # TODO(synk): H1 persistence intervals (Rips simplex-tree reduction) have
    # no Pallas equivalent; the dim-1 half of the flat diagram stays zero.

    # ---- Betti-0 curve: B0(eps) = N - #{MST edge^2 <= eps^2}, then one matmul
    # against the zero-padded interpolation matrix (dim-1 rows stay zero).
    eps2 = eps2_ref[...]                                      # (K, 1)
    le = (w_lan <= eps2[None, :, :]) & (lane3 < (N - 1))      # (BB, K, N)
    cnt = jnp.sum(le.astype(jnp.float32), axis=2)             # (BB, K)
    betti0 = jnp.float32(N) - cnt
    betti_ref[0] = jnp.dot(betti0, interp_ref[...],
                           preferred_element_type=jnp.float32)


def _build_interp_matrix(num_samples, num_filtrations):
    """W such that np.interp(linspace(0,1,NF), linspace(0,1,K), f) == f @ W."""
    if num_samples == num_filtrations:
        return np.eye(num_filtrations, dtype=np.float32)
    xq = np.linspace(0.0, 1.0, num_filtrations)
    xs = np.linspace(0.0, 1.0, num_samples)
    basis = np.eye(num_samples, dtype=np.float64)
    rows = [np.interp(xq, xs, basis[s]) for s in range(num_samples)]
    return np.stack(rows, axis=0).astype(np.float32)          # (K, NF)


def _choose_bb(B, N):
    """Clouds per grid step: fill sublanes/lanes, keep grid >= 2 for v7x cores."""
    bb = max(1, 128 // max(1, N))
    bb = min(bb, B)
    if B >= 2:
        bb = min(bb, (B + 1) // 2)    # keep >= 2 grid steps (v7x has 2 TCs)
    return max(1, bb)


def persistent_homology_forward(x, filtration_values, max_dimension=1):
    """x: (B, N, F) float point clouds;  filtration_values: (num_filtrations,)."""
    B, N, F = x.shape
    NF = int(filtration_values.shape[0])
    NDIM = max_dimension + 1
    MAXP = MAX_DIAG_POINTS
    DIAG_W = NDIM * MAXP * 2
    BETTI_W = NDIM * NF

    # Reference's step-sampling of the (learnable) filtration values.  The MST
    # runs on squared distances, so pre-square the thresholds (negative eps ->
    # sentinel that no squared distance can satisfy).
    step = max(1, NF // 10)
    eps = jnp.asarray(filtration_values, jnp.float32)[::step]
    K = int(eps.shape[0])
    eps2_col = jnp.where(eps >= 0, eps * eps, jnp.float32(-1.0)).reshape(K, 1)

    interp = np.zeros((K, BETTI_W), np.float32)
    interp[:, :NF] = _build_interp_matrix(K, NF)
    interp_w = jnp.asarray(interp)                            # (K, NDIM*NF)

    # Batch-tile BB point clouds per grid step; pad B up to a multiple of BB.
    BB = _choose_bb(B, N)
    G = -(-B // BB)
    Bpad = G * BB
    xf = x.astype(jnp.float32)
    if Bpad != B:
        xf = jnp.concatenate(
            [xf, jnp.zeros((Bpad - B, N, F), jnp.float32)], axis=0)
    xg = xf.reshape(G, BB, N, F)

    out_shape = (
        jax.ShapeDtypeStruct((G, BB, DIAG_W), jnp.float32),
        jax.ShapeDtypeStruct((G, BB, BETTI_W), jnp.float32),
    )
    grid_spec = pltpu.PrefetchScalarGridSpec(
        num_scalar_prefetch=0,
        grid=(G,),
        in_specs=[
            pl.BlockSpec((1, BB, N, F), lambda g: (g, 0, 0, 0)),
            pl.BlockSpec((K, 1), lambda g: (0, 0)),
            pl.BlockSpec((K, BETTI_W), lambda g: (0, 0)),
        ],
        out_specs=[
            pl.BlockSpec((1, BB, DIAG_W), lambda g: (g, 0, 0)),
            pl.BlockSpec((1, BB, BETTI_W), lambda g: (g, 0, 0)),
        ],
    )
    diag_flat, betti_flat = pl.pallas_call(
        _ph_kernel,
        out_shape=out_shape,
        grid_spec=grid_spec,
        compiler_params=pltpu.CompilerParams(
            dimension_semantics=("parallel",)),
    )(xg, eps2_col, interp_w)

    diags = diag_flat.reshape(Bpad, NDIM, MAXP, 2)[:B]
    betti = betti_flat.reshape(Bpad, NDIM, NF)[:B]
    return {"persistence_diagrams": diags, "betti_curves": betti}


if __name__ == "__main__":
    key = jax.random.PRNGKey(0)
    B, N, F = 4, 16, 8                       # small point clouds: 16 points, 8 features
    x = jax.random.normal(key, (B, N, F), dtype=jnp.float32)

    # Deterministic parameter init, as in __init__: linspace(0, max_edge_length, NF)
    max_edge_length, num_filtrations, max_dimension = 2.0, 20, 1
    filtration_values = jnp.linspace(0.0, max_edge_length, num_filtrations,
                                     dtype=jnp.float32)

    out = persistent_homology_forward(x, filtration_values,
                                      max_dimension=max_dimension)
    out = jax.block_until_ready(out)

    assert out["persistence_diagrams"].shape == (B, max_dimension + 1, 20, 2)
    assert out["betti_curves"].shape == (B, max_dimension + 1, num_filtrations)
    assert bool(jnp.all(jnp.isfinite(out["persistence_diagrams"])))
    assert bool(jnp.all(jnp.isfinite(out["betti_curves"])))
    print("KERNEL_OK")
</pallas_src>

<mosaic_0001>
module attributes {stable_mosaic.version = 11 : i64} {
  func.func @_ph_kernel(%arg0: i32, %arg1: memref<1x2x16x8xf32, #tpu.memory_space<vmem>>, %arg2: memref<10x1xf32, #tpu.memory_space<vmem>>, %arg3: memref<10x40xf32, #tpu.memory_space<vmem>>, %arg4: memref<1x2x80xf32, #tpu.memory_space<vmem>>, %arg5: memref<1x2x40xf32, #tpu.memory_space<vmem>>) attributes {dimension_semantics = [#tpu.dimension_semantics<parallel>], iteration_bounds = array<i64: 2>, scalar_prefetch = 0 : i64, scratch_operands = 0 : i64, tpu.core_type = #tpu.core_type<tc>, window_params = [{transform_indices = @transform_0, window_bounds = array<i64: 1, 2, 16, 8>}, {pipeline_mode = #tpu.pipeline_mode<synchronous>, transform_indices = @transform_1, window_bounds = array<i64: 10, 1>}, {pipeline_mode = #tpu.pipeline_mode<synchronous>, transform_indices = @transform_2, window_bounds = array<i64: 10, 40>}, {transform_indices = @transform_3, window_bounds = array<i64: 1, 2, 80>}, {transform_indices = @transform_4, window_bounds = array<i64: 1, 2, 40>}]} {
    %c0 = arith.constant 0 : index
    %c0_0 = arith.constant 0 : index
    %c0_1 = arith.constant 0 : index
    %c0_2 = arith.constant 0 : index
    %0 = vector.load %arg1[%c0, %c0_0, %c0_1, %c0_2] : memref<1x2x16x8xf32, #tpu.memory_space<vmem>>, vector<1x2x16x8xf32>
    %1 = vector.shape_cast %0 : vector<1x2x16x8xf32> to vector<2x16x8xf32>
    %2 = arith.mulf %1, %1 : vector<2x16x8xf32>
    %cst = arith.constant dense<0.000000e+00> : vector<2x16xf32>
    %3 = vector.multi_reduction <add>, %2, %cst [2] : vector<2x16x8xf32> to vector<2x16xf32>
    "tpu.trace_start"() <{level = 10 : i32, message = "bnf,bmf->bnm"}> : () -> ()
    %cst_3 = arith.constant dense<0.000000e+00> : vector<2x16x16xf32>
    %4 = tpu.matmul %1, %1, %cst_3 {dimension_numbers = #tpu.dot_dimension_numbers<[2], [2], [1], [1], [0, 0, 0, 1, 1, 1], [0], [0]>} : vector<2x16x8xf32>, vector<2x16x8xf32>, vector<2x16x16xf32> -> vector<2x16x16xf32>
    "tpu.trace_stop"() : () -> ()
    %5 = vector.shape_cast %3 : vector<2x16xf32> to vector<2x16x1xf32>
    %6 = vector.shape_cast %3 : vector<2x16xf32> to vector<2x1x16xf32>
    %7 = vector.broadcast %5 : vector<2x16x1xf32> to vector<2x16x16xf32>
    %8 = vector.broadcast %6 : vector<2x1x16xf32> to vector<2x16x16xf32>
    %9 = arith.addf %7, %8 : vector<2x16x16xf32>
    %cst_4 = arith.constant 2.000000e+00 : f32
    %10 = vector.broadcast %cst_4 : f32 to vector<2x16x16xf32>
    %11 = arith.mulf %10, %4 : vector<2x16x16xf32>
    %12 = arith.subf %9, %11 : vector<2x16x16xf32>
    %cst_5 = arith.constant 0.000000e+00 : f32
    %13 = vector.broadcast %cst_5 : f32 to vector<2x16x16xf32>
    %14 = arith.maximumf %12, %13 : vector<2x16x16xf32>
    %15 = tpu.iota {dimensions = array<i32: 1>} : vector<2x16xi32>
    %16 = tpu.iota {dimensions = array<i32: 1>} : vector<2x16x1xi32>
    %17 = tpu.iota {dimensions = array<i32: 2>} : vector<2x1x16xi32>
    %18 = vector.extract_strided_slice %14 {offsets = [0, 0, 0], sizes = [2, 1, 16], strides = [1, 1, 1]} : vector<2x16x16xf32> to vector<2x1x16xf32>
    %19 = vector.shape_cast %18 : vector<2x1x16xf32> to vector<2x16xf32>
    %c0_i32 = arith.constant 0 : i32
    %20 = vector.broadcast %c0_i32 : i32 to vector<2x16xi32>
    %21 = arith.cmpi eq, %15, %20 : vector<2x16xi32>
    %cst_6 = arith.constant 0.000000e+00 : f32
    %22 = vector.broadcast %cst_6 : f32 to vector<2x16xf32>
    %cst_7 = arith.constant 1.000000e+30 : f32
    %c1_i32 = arith.constant 1 : i32
    %23 = vector.broadcast %cst_7 : f32 to vector<2x16xf32>
    %24 = arith.select %21, %23, %19 : vector<2x16xi1>, vector<2x16xf32>
    %cst_8 = arith.constant dense<0x7F800000> : vector<2xf32>
    %25 = vector.multi_reduction <minimumf>, %24, %cst_8 [1] : vector<2x16xf32> to vector<2xf32>
    %26 = vector.shape_cast %25 : vector<2xf32> to vector<2x1xf32>
    %27 = vector.broadcast %26 : vector<2x1xf32> to vector<2x16xf32>
    %28 = arith.cmpf oeq, %24, %27 : vector<2x16xf32>
    %c16_i32 = arith.constant 16 : i32
    %29 = vector.broadcast %c16_i32 : i32 to vector<2x16xi32>
    %30 = arith.select %28, %15, %29 : vector<2x16xi1>, vector<2x16xi32>
    %cst_9 = arith.constant dense<2147483647> : vector<2xi32>
    %31 = vector.multi_reduction <minsi>, %30, %cst_9 [1] : vector<2x16xi32> to vector<2xi32>
    %32 = vector.shape_cast %31 : vector<2xi32> to vector<2x1xi32>
    %33 = vector.broadcast %32 : vector<2x1xi32> to vector<2x16xi32>
    %34 = arith.cmpi eq, %15, %33 : vector<2x16xi32>
    %35 = arith.ori %21, %34 : vector<2x16xi1>
    %c1_i32_10 = arith.constant 1 : i32
    %36 = arith.subi %c1_i32, %c1_i32_10 : i32
    %37 = vector.broadcast %36 : i32 to vector<2x16xi32>
    %38 = arith.cmpi eq, %15, %37 : vector<2x16xi32>
    %cst_11 = arith.constant 0.000000e+00 : f32
    %39 = vector.shape_cast %26 : vector<2x1xf32> to vector<2x1xf32>
    %40 = vector.broadcast %39 : vector<2x1xf32> to vector<2x16xf32>
    %41 = vector.broadcast %cst_11 : f32 to vector<2x16xf32>
    %42 = arith.select %38, %40, %41 : vector<2x16xi1>, vector<2x16xf32>
    %43 = arith.addf %22, %42 : vector<2x16xf32>
    %44 = vector.shape_cast %32 : vector<2x1xi32> to vector<2x1x1xi32>
    %45 = vector.broadcast %44 : vector<2x1x1xi32> to vector<2x16x1xi32>
    %46 = arith.cmpi eq, %16, %45 : vector<2x16x1xi32>
    %47 = vector.shape_cast %46 : vector<2x16x1xi1> to vector<2x16x1xi1>
    %48 = vector.broadcast %47 : vector<2x16x1xi1> to vector<2x16x16xi1>
    %49 = vector.broadcast %cst_7 : f32 to vector<2x16x16xf32>
    %50 = arith.select %48, %14, %49 : vector<2x16x16xi1>, vector<2x16x16xf32>
    %cst_12 = arith.constant dense<0x7F800000> : vector<2x16xf32>
    %51 = vector.multi_reduction <minimumf>, %50, %cst_12 [1] : vector<2x16x16xf32> to vector<2x16xf32>
    %52 = arith.minimumf %19, %51 : vector<2x16xf32>
    %c2_i32 = arith.constant 2 : i32
    %53 = vector.broadcast %cst_7 : f32 to vector<2x16xf32>
    %54 = arith.select %35, %53, %52 : vector<2x16xi1>, vector<2x16xf32>
    %cst_13 = arith.constant dense<0x7F800000> : vector<2xf32>
    %55 = vector.multi_reduction <minimumf>, %54, %cst_13 [1] : vector<2x16xf32> to vector<2xf32>
    %56 = vector.shape_cast %55 : vector<2xf32> to vector<2x1xf32>
    %57 = vector.broadcast %56 : vector<2x1xf32> to vector<2x16xf32>
    %58 = arith.cmpf oeq, %54, %57 : vector<2x16xf32>
    %c16_i32_14 = arith.constant 16 : i32
    %59 = vector.broadcast %c16_i32_14 : i32 to vector<2x16xi32>
    %60 = arith.select %58, %15, %59 : vector<2x16xi1>, vector<2x16xi32>
    %cst_15 = arith.constant dense<2147483647> : vector<2xi32>
    %61 = vector.multi_reduction <minsi>, %60, %cst_15 [1] : vector<2x16xi32> to vector<2xi32>
    %62 = vector.shape_cast %61 : vector<2xi32> to vector<2x1xi32>
    %63 = vector.broadcast %62 : vector<2x1xi32> to vector<2x16xi32>
    %64 = arith.cmpi eq, %15, %63 : vector<2x16xi32>
    %65 = arith.ori %35, %64 : vector<2x16xi1>
    %c1_i32_16 = arith.constant 1 : i32
    %66 = arith.subi %c2_i32, %c1_i32_16 : i32
    %67 = vector.broadcast %66 : i32 to vector<2x16xi32>
    %68 = arith.cmpi eq, %15, %67 : vector<2x16xi32>
    %cst_17 = arith.constant 0.000000e+00 : f32
    %69 = vector.shape_cast %56 : vector<2x1xf32> to vector<2x1xf32>
    %70 = vector.broadcast %69 : vector<2x1xf32> to vector<2x16xf32>
    %71 = vector.broadcast %cst_17 : f32 to vector<2x16xf32>
    %72 = arith.select %68, %70, %71 : vector<2x16xi1>, vector<2x16xf32>
    %73 = arith.addf %43, %72 : vector<2x16xf32>
    %74 = vector.shape_cast %62 : vector<2x1xi32> to vector<2x1x1xi32>
    %75 = vector.broadcast %74 : vector<2x1x1xi32> to vector<2x16x1xi32>
    %76 = arith.cmpi eq, %16, %75 : vector<2x16x1xi32>
    %77 = vector.shape_cast %76 : vector<2x16x1xi1> to vector<2x16x1xi1>
    %78 = vector.broadcast %77 : vector<2x16x1xi1> to vector<2x16x16xi1>
    %79 = vector.broadcast %cst_7 : f32 to vector<2x16x16xf32>
    %80 = arith.select %78, %14, %79 : vector<2x16x16xi1>, vector<2x16x16xf32>
    %cst_18 = arith.constant dense<0x7F800000> : vector<2x16xf32>
    %81 = vector.multi_reduction <minimumf>, %80, %cst_18 [1] : vector<2x16x16xf32> to vector<2x16xf32>
    %82 = arith.minimumf %52, %81 : vector<2x16xf32>
    %c3_i32 = arith.constant 3 : i32
    %83 = vector.broadcast %cst_7 : f32 to vector<2x16xf32>
    %84 = arith.select %65, %83, %82 : vector<2x16xi1>, vector<2x16xf32>
    %cst_19 = arith.constant dense<0x7F800000> : vector<2xf32>
    %85 = vector.multi_reduction <minimumf>, %84, %cst_19 [1] : vector<2x16xf32> to vector<2xf32>
    %86 = vector.shape_cast %85 : vector<2xf32> to vector<2x1xf32>
    %87 = vector.broadcast %86 : vector<2x1xf32> to vector<2x16xf32>
    %88 = arith.cmpf oeq, %84, %87 : vector<2x16xf32>
    %c16_i32_20 = arith.constant 16 : i32
    %89 = vector.broadcast %c16_i32_20 : i32 to vector<2x16xi32>
    %90 = arith.select %88, %15, %89 : vector<2x16xi1>, vector<2x16xi32>
    %cst_21 = arith.constant dense<2147483647> : vector<2xi32>
    %91 = vector.multi_reduction <minsi>, %90, %cst_21 [1] : vector<2x16xi32> to vector<2xi32>
    %92 = vector.shape_cast %91 : vector<2xi32> to vector<2x1xi32>
    %93 = vector.broadcast %92 : vector<2x1xi32> to vector<2x16xi32>
    %94 = arith.cmpi eq, %15, %93 : vector<2x16xi32>
    %95 = arith.ori %65, %94 : vector<2x16xi1>
    %c1_i32_22 = arith.constant 1 : i32
    %96 = arith.subi %c3_i32, %c1_i32_22 : i32
    %97 = vector.broadcast %96 : i32 to vector<2x16xi32>
    %98 = arith.cmpi eq, %15, %97 : vector<2x16xi32>
    %cst_23 = arith.constant 0.000000e+00 : f32
    %99 = vector.shape_cast %86 : vector<2x1xf32> to vector<2x1xf32>
    %100 = vector.broadcast %99 : vector<2x1xf32> to vector<2x16xf32>
    %101 = vector.broadcast %cst_23 : f32 to vector<2x16xf32>
    %102 = arith.select %98, %100, %101 : vector<2x16xi1>, vector<2x16xf32>
    %103 = arith.addf %73, %102 : vector<2x16xf32>
    %104 = vector.shape_cast %92 : vector<2x1xi32> to vector<2x1x1xi32>
    %105 = vector.broadcast %104 : vector<2x1x1xi32> to vector<2x16x1xi32>
    %106 = arith.cmpi eq, %16, %105 : vector<2x16x1xi32>
    %107 = vector.shape_cast %106 : vector<2x16x1xi1> to vector<2x16x1xi1>
    %108 = vector.broadcast %107 : vector<2x16x1xi1> to vector<2x16x16xi1>
    %109 = vector.broadcast %cst_7 : f32 to vector<2x16x16xf32>
    %110 = arith.select %108, %14, %109 : vector<2x16x16xi1>, vector<2x16x16xf32>
    %cst_24 = arith.constant dense<0x7F800000> : vector<2x16xf32>
    %111 = vector.multi_reduction <minimumf>, %110, %cst_24 [1] : vector<2x16x16xf32> to vector<2x16xf32>
    %112 = arith.minimumf %82, %111 : vector<2x16xf32>
    %c4_i32 = arith.constant 4 : i32
    %113 = vector.broadcast %cst_7 : f32 to vector<2x16xf32>
    %114 = arith.select %95, %113, %112 : vector<2x16xi1>, vector<2x16xf32>
    %cst_25 = arith.constant dense<0x7F800000> : vector<2xf32>
    %115 = vector.multi_reduction <minimumf>, %114, %cst_25 [1] : vector<2x16xf32> to vector<2xf32>
    %116 = vector.shape_cast %115 : vector<2xf32> to vector<2x1xf32>
    %117 = vector.broadcast %116 : vector<2x1xf32> to vector<2x16xf32>
    %118 = arith.cmpf oeq, %114, %117 : vector<2x16xf32>
    %c16_i32_26 = arith.constant 16 : i32
    %119 = vector.broadcast %c16_i32_26 : i32 to vector<2x16xi32>
    %120 = arith.select %118, %15, %119 : vector<2x16xi1>, vector<2x16xi32>
    %cst_27 = arith.constant dense<2147483647> : vector<2xi32>
    %121 = vector.multi_reduction <minsi>, %120, %cst_27 [1] : vector<2x16xi32> to vector<2xi32>
    %122 = vector.shape_cast %121 : vector<2xi32> to vector<2x1xi32>
    %123 = vector.broadcast %122 : vector<2x1xi32> to vector<2x16xi32>
    %124 = arith.cmpi eq, %15, %123 : vector<2x16xi32>
    %125 = arith.ori %95, %124 : vector<2x16xi1>
    %c1_i32_28 = arith.constant 1 : i32
    %126 = arith.subi %c4_i32, %c1_i32_28 : i32
    %127 = vector.broadcast %126 : i32 to vector<2x16xi32>
    %128 = arith.cmpi eq, %15, %127 : vector<2x16xi32>
    %cst_29 = arith.constant 0.000000e+00 : f32
    %129 = vector.shape_cast %116 : vector<2x1xf32> to vector<2x1xf32>
    %130 = vector.broadcast %129 : vector<2x1xf32> to vector<2x16xf32>
    %131 = vector.broadcast %cst_29 : f32 to vector<2x16xf32>
    %132 = arith.select %128, %130, %131 : vector<2x16xi1>, vector<2x16xf32>
    %133 = arith.addf %103, %132 : vector<2x16xf32>
    %134 = vector.shape_cast %122 : vector<2x1xi32> to vector<2x1x1xi32>
    %135 = vector.broadcast %134 : vector<2x1x1xi32> to vector<2x16x1xi32>
    %136 = arith.cmpi eq, %16, %135 : vector<2x16x1xi32>
    %137 = vector.shape_cast %136 : vector<2x16x1xi1> to vector<2x16x1xi1>
    %138 = vector.broadcast %137 : vector<2x16x1xi1> to vector<2x16x16xi1>
    %139 = vector.broadcast %cst_7 : f32 to vector<2x16x16xf32>
    %140 = arith.select %138, %14, %139 : vector<2x16x16xi1>, vector<2x16x16xf32>
    %cst_30 = arith.constant dense<0x7F800000> : vector<2x16xf32>
    %141 = vector.multi_reduction <minimumf>, %140, %cst_30 [1] : vector<2x16x16xf32> to vector<2x16xf32>
    %142 = arith.minimumf %112, %141 : vector<2x16xf32>
    %c5_i32 = arith.constant 5 : i32
    %143 = vector.broadcast %cst_7 : f32 to vector<2x16xf32>
    %144 = arith.select %125, %143, %142 : vector<2x16xi1>, vector<2x16xf32>
    %cst_31 = arith.constant dense<0x7F800000> : vector<2xf32>
    %145 = vector.multi_reduction <minimumf>, %144, %cst_31 [1] : vector<2x16xf32> to vector<2xf32>
    %146 = vector.shape_cast %145 : vector<2xf32> to vector<2x1xf32>
    %147 = vector.broadcast %146 : vector<2x1xf32> to vector<2x16xf32>
    %148 = arith.cmpf oeq, %144, %147 : vector<2x16xf32>
    %c16_i32_32 = arith.constant 16 : i32
    %149 = vector.broadcast %c16_i32_32 : i32 to vector<2x16xi32>
    %150 = arith.select %148, %15, %149 : vector<2x16xi1>, vector<2x16xi32>
    %cst_33 = arith.constant dense<2147483647> : vector<2xi32>
    %151 = vector.multi_reduction <minsi>, %150, %cst_33 [1] : vector<2x16xi32> to vector<2xi32>
    %152 = vector.shape_cast %151 : vector<2xi32> to vector<2x1xi32>
    %153 = vector.broadcast %152 : vector<2x1xi32> to vector<2x16xi32>
    %154 = arith.cmpi eq, %15, %153 : vector<2x16xi32>
    %155 = arith.ori %125, %154 : vector<2x16xi1>
    %c1_i32_34 = arith.constant 1 : i32
    %156 = arith.subi %c5_i32, %c1_i32_34 : i32
    %157 = vector.broadcast %156 : i32 to vector<2x16xi32>
    %158 = arith.cmpi eq, %15, %157 : vector<2x16xi32>
    %cst_35 = arith.constant 0.000000e+00 : f32
    %159 = vector.shape_cast %146 : vector<2x1xf32> to vector<2x1xf32>
    %160 = vector.broadcast %159 : vector<2x1xf32> to vector<2x16xf32>
    %161 = vector.broadcast %cst_35 : f32 to vector<2x16xf32>
    %162 = arith.select %158, %160, %161 : vector<2x16xi1>, vector<2x16xf32>
    %163 = arith.addf %133, %162 : vector<2x16xf32>
    %164 = vector.shape_cast %152 : vector<2x1xi32> to vector<2x1x1xi32>
    %165 = vector.broadcast %164 : vector<2x1x1xi32> to vector<2x16x1xi32>
    %166 = arith.cmpi eq, %16, %165 : vector<2x16x1xi32>
    %167 = vector.shape_cast %166 : vector<2x16x1xi1> to vector<2x16x1xi1>
    %168 = vector.broadcast %167 : vector<2x16x1xi1> to vector<2x16x16xi1>
    %169 = vector.broadcast %cst_7 : f32 to vector<2x16x16xf32>
    %170 = arith.select %168, %14, %169 : vector<2x16x16xi1>, vector<2x16x16xf32>
    %cst_36 = arith.constant dense<0x7F800000> : vector<2x16xf32>
    %171 = vector.multi_reduction <minimumf>, %170, %cst_36 [1] : vector<2x16x16xf32> to vector<2x16xf32>
    %172 = arith.minimumf %142, %171 : vector<2x16xf32>
    %c6_i32 = arith.constant 6 : i32
    %173 = vector.broadcast %cst_7 : f32 to vector<2x16xf32>
    %174 = arith.select %155, %173, %172 : vector<2x16xi1>, vector<2x16xf32>
    %cst_37 = arith.constant dense<0x7F800000> : vector<2xf32>
    %175 = vector.multi_reduction <minimumf>, %174, %cst_37 [1] : vector<2x16xf32> to vector<2xf32>
    %176 = vector.shape_cast %175 : vector<2xf32> to vector<2x1xf32>
    %177 = vector.broadcast %176 : vector<2x1xf32> to vector<2x16xf32>
    %178 = arith.cmpf oeq, %174, %177 : vector<2x16xf32>
    %c16_i32_38 = arith.constant 16 : i32
    %179 = vector.broadcast %c16_i32_38 : i32 to vector<2x16xi32>
    %180 = arith.select %178, %15, %179 : vector<2x16xi1>, vector<2x16xi32>
    %cst_39 = arith.constant dense<2147483647> : vector<2xi32>
    %181 = vector.multi_reduction <minsi>, %180, %cst_39 [1] : vector<2x16xi32> to vector<2xi32>
    %182 = vector.shape_cast %181 : vector<2xi32> to vector<2x1xi32>
    %183 = vector.broadcast %182 : vector<2x1xi32> to vector<2x16xi32>
    %184 = arith.cmpi eq, %15, %183 : vector<2x16xi32>
    %185 = arith.ori %155, %184 : vector<2x16xi1>
    %c1_i32_40 = arith.constant 1 : i32
    %186 = arith.subi %c6_i32, %c1_i32_40 : i32
    %187 = vector.broadcast %186 : i32 to vector<2x16xi32>
    %188 = arith.cmpi eq, %15, %187 : vector<2x16xi32>
    %cst_41 = arith.constant 0.000000e+00 : f32
    %189 = vector.shape_cast %176 : vector<2x1xf32> to vector<2x1xf32>
    %190 = vector.broadcast %189 : vector<2x1xf32> to vector<2x16xf32>
    %191 = vector.broadcast %cst_41 : f32 to vector<2x16xf32>
    %192 = arith.select %188, %190, %191 : vector<2x16xi1>, vector<2x16xf32>
    %193 = arith.addf %163, %192 : vector<2x16xf32>
    %194 = vector.shape_cast %182 : vector<2x1xi32> to vector<2x1x1xi32>
    %195 = vector.broadcast %194 : vector<2x1x1xi32> to vector<2x16x1xi32>
    %196 = arith.cmpi eq, %16, %195 : vector<2x16x1xi32>
    %197 = vector.shape_cast %196 : vector<2x16x1xi1> to vector<2x16x1xi1>
    %198 = vector.broadcast %197 : vector<2x16x1xi1> to vector<2x16x16xi1>
    %199 = vector.broadcast %cst_7 : f32 to vector<2x16x16xf32>
    %200 = arith.select %198, %14, %199 : vector<2x16x16xi1>, vector<2x16x16xf32>
    %cst_42 = arith.constant dense<0x7F800000> : vector<2x16xf32>
    %201 = vector.multi_reduction <minimumf>, %200, %cst_42 [1] : vector<2x16x16xf32> to vector<2x16xf32>
    %202 = arith.minimumf %172, %201 : vector<2x16xf32>
    %c7_i32 = arith.constant 7 : i32
    %203 = vector.broadcast %cst_7 : f32 to vector<2x16xf32>
    %204 = arith.select %185, %203, %202 : vector<2x16xi1>, vector<2x16xf32>
    %cst_43 = arith.constant dense<0x7F800000> : vector<2xf32>
    %205 = vector.multi_reduction <minimumf>, %204, %cst_43 [1] : vector<2x16xf32> to vector<2xf32>
    %206 = vector.shape_cast %205 : vector<2xf32> to vector<2x1xf32>
    %207 = vector.broadcast %206 : vector<2x1xf32> to vector<2x16xf32>
    %208 = arith.cmpf oeq, %204, %207 : vector<2x16xf32>
    %c16_i32_44 = arith.constant 16 : i32
    %209 = vector.broadcast %c16_i32_44 : i32 to vector<2x16xi32>
    %210 = arith.select %208, %15, %209 : vector<2x16xi1>, vector<2x16xi32>
    %cst_45 = arith.constant dense<2147483647> : vector<2xi32>
    %211 = vector.multi_reduction <minsi>, %210, %cst_45 [1] : vector<2x16xi32> to vector<2xi32>
    %212 = vector.shape_cast %211 : vector<2xi32> to vector<2x1xi32>
    %213 = vector.broadcast %212 : vector<2x1xi32> to vector<2x16xi32>
    %214 = arith.cmpi eq, %15, %213 : vector<2x16xi32>
    %215 = arith.ori %185, %214 : vector<2x16xi1>
    %c1_i32_46 = arith.constant 1 : i32
    %216 = arith.subi %c7_i32, %c1_i32_46 : i32
    %217 = vector.broadcast %216 : i32 to vector<2x16xi32>
    %218 = arith.cmpi eq, %15, %217 : vector<2x16xi32>
    %cst_47 = arith.constant 0.000000e+00 : f32
    %219 = vector.shape_cast %206 : vector<2x1xf32> to vector<2x1xf32>
    %220 = vector.broadcast %219 : vector<2x1xf32> to vector<2x16xf32>
    %221 = vector.broadcast %cst_47 : f32 to vector<2x16xf32>
    %222 = arith.select %218, %220, %221 : vector<2x16xi1>, vector<2x16xf32>
    %223 = arith.addf %193, %222 : vector<2x16xf32>
    %224 = vector.shape_cast %212 : vector<2x1xi32> to vector<2x1x1xi32>
    %225 = vector.broadcast %224 : vector<2x1x1xi32> to vector<2x16x1xi32>
    %226 = arith.cmpi eq, %16, %225 : vector<2x16x1xi32>
    %227 = vector.shape_cast %226 : vector<2x16x1xi1> to vector<2x16x1xi1>
    %228 = vector.broadcast %227 : vector<2x16x1xi1> to vector<2x16x16xi1>
    %229 = vector.broadcast %cst_7 : f32 to vector<2x16x16xf32>
    %230 = arith.select %228, %14, %229 : vector<2x16x16xi1>, vector<2x16x16xf32>
    %cst_48 = arith.constant dense<0x7F800000> : vector<2x16xf32>
    %231 = vector.multi_reduction <minimumf>, %230, %cst_48 [1] : vector<2x16x16xf32> to vector<2x16xf32>
    %232 = arith.minimumf %202, %231 : vector<2x16xf32>
    %c8_i32 = arith.constant 8 : i32
    %233 = vector.broadcast %cst_7 : f32 to vector<2x16xf32>
    %234 = arith.select %215, %233, %232 : vector<2x16xi1>, vector<2x16xf32>
    %cst_49 = arith.constant dense<0x7F800000> : vector<2xf32>
    %235 = vector.multi_reduction <minimumf>, %234, %cst_49 [1] : vector<2x16xf32> to vector<2xf32>
    %236 = vector.shape_cast %235 : vector<2xf32> to vector<2x1xf32>
    %237 = vector.broadcast %236 : vector<2x1xf32> to vector<2x16xf32>
    %238 = arith.cmpf oeq, %234, %237 : vector<2x16xf32>
    %c16_i32_50 = arith.constant 16 : i32
    %239 = vector.broadcast %c16_i32_50 : i32 to vector<2x16xi32>
    %240 = arith.select %238, %15, %239 : vector<2x16xi1>, vector<2x16xi32>
    %cst_51 = arith.constant dense<2147483647> : vector<2xi32>
    %241 = vector.multi_reduction <minsi>, %240, %cst_51 [1] : vector<2x16xi32> to vector<2xi32>
    %242 = vector.shape_cast %241 : vector<2xi32> to vector<2x1xi32>
    %243 = vector.broadcast %242 : vector<2x1xi32> to vector<2x16xi32>
    %244 = arith.cmpi eq, %15, %243 : vector<2x16xi32>
    %245 = arith.ori %215, %244 : vector<2x16xi1>
    %c1_i32_52 = arith.constant 1 : i32
    %246 = arith.subi %c8_i32, %c1_i32_52 : i32
    %247 = vector.broadcast %246 : i32 to vector<2x16xi32>
    %248 = arith.cmpi eq, %15, %247 : vector<2x16xi32>
    %cst_53 = arith.constant 0.000000e+00 : f32
    %249 = vector.shape_cast %236 : vector<2x1xf32> to vector<2x1xf32>
    %250 = vector.broadcast %249 : vector<2x1xf32> to vector<2x16xf32>
    %251 = vector.broadcast %cst_53 : f32 to vector<2x16xf32>
    %252 = arith.select %248, %250, %251 : vector<2x16xi1>, vector<2x16xf32>
    %253 = arith.addf %223, %252 : vector<2x16xf32>
    %254 = vector.shape_cast %242 : vector<2x1xi32> to vector<2x1x1xi32>
    %255 = vector.broadcast %254 : vector<2x1x1xi32> to vector<2x16x1xi32>
    %256 = arith.cmpi eq, %16, %255 : vector<2x16x1xi32>
    %257 = vector.shape_cast %256 : vector<2x16x1xi1> to vector<2x16x1xi1>
    %258 = vector.broadcast %257 : vector<2x16x1xi1> to vector<2x16x16xi1>
    %259 = vector.broadcast %cst_7 : f32 to vector<2x16x16xf32>
    %260 = arith.select %258, %14, %259 : vector<2x16x16xi1>, vector<2x16x16xf32>
    %cst_54 = arith.constant dense<0x7F800000> : vector<2x16xf32>
    %261 = vector.multi_reduction <minimumf>, %260, %cst_54 [1] : vector<2x16x16xf32> to vector<2x16xf32>
    %262 = arith.minimumf %232, %261 : vector<2x16xf32>
    %c9_i32 = arith.constant 9 : i32
    %263 = vector.broadcast %cst_7 : f32 to vector<2x16xf32>
    %264 = arith.select %245, %263, %262 : vector<2x16xi1>, vector<2x16xf32>
    %cst_55 = arith.constant dense<0x7F800000> : vector<2xf32>
    %265 = vector.multi_reduction <minimumf>, %264, %cst_55 [1] : vector<2x16xf32> to vector<2xf32>
    %266 = vector.shape_cast %265 : vector<2xf32> to vector<2x1xf32>
    %267 = vector.broadcast %266 : vector<2x1xf32> to vector<2x16xf32>
    %268 = arith.cmpf oeq, %264, %267 : vector<2x16xf32>
    %c16_i32_56 = arith.constant 16 : i32
    %269 = vector.broadcast %c16_i32_56 : i32 to vector<2x16xi32>
    %270 = arith.select %268, %15, %269 : vector<2x16xi1>, vector<2x16xi32>
    %cst_57 = arith.constant dense<2147483647> : vector<2xi32>
    %271 = vector.multi_reduction <minsi>, %270, %cst_57 [1] : vector<2x16xi32> to vector<2xi32>
    %272 = vector.shape_cast %271 : vector<2xi32> to vector<2x1xi32>
    %273 = vector.broadcast %272 : vector<2x1xi32> to vector<2x16xi32>
    %274 = arith.cmpi eq, %15, %273 : vector<2x16xi32>
    %275 = arith.ori %245, %274 : vector<2x16xi1>
    %c1_i32_58 = arith.constant 1 : i32
    %276 = arith.subi %c9_i32, %c1_i32_58 : i32
    %277 = vector.broadcast %276 : i32 to vector<2x16xi32>
    %278 = arith.cmpi eq, %15, %277 : vector<2x16xi32>
    %cst_59 = arith.constant 0.000000e+00 : f32
    %279 = vector.shape_cast %266 : vector<2x1xf32> to vector<2x1xf32>
    %280 = vector.broadcast %279 : vector<2x1xf32> to vector<2x16xf32>
    %281 = vector.broadcast %cst_59 : f32 to vector<2x16xf32>
    %282 = arith.select %278, %280, %281 : vector<2x16xi1>, vector<2x16xf32>
    %283 = arith.addf %253, %282 : vector<2x16xf32>
    %284 = vector.shape_cast %272 : vector<2x1xi32> to vector<2x1x1xi32>
    %285 = vector.broadcast %284 : vector<2x1x1xi32> to vector<2x16x1xi32>
    %286 = arith.cmpi eq, %16, %285 : vector<2x16x1xi32>
    %287 = vector.shape_cast %286 : vector<2x16x1xi1> to vector<2x16x1xi1>
    %288 = vector.broadcast %287 : vector<2x16x1xi1> to vector<2x16x16xi1>
    %289 = vector.broadcast %cst_7 : f32 to vector<2x16x16xf32>
    %290 = arith.select %288, %14, %289 : vector<2x16x16xi1>, vector<2x16x16xf32>
    %cst_60 = arith.constant dense<0x7F800000> : vector<2x16xf32>
    %291 = vector.multi_reduction <minimumf>, %290, %cst_60 [1] : vector<2x16x16xf32> to vector<2x16xf32>
    %292 = arith.minimumf %262, %291 : vector<2x16xf32>
    %c10_i32 = arith.constant 10 : i32
    %293 = vector.broadcast %cst_7 : f32 to vector<2x16xf32>
    %294 = arith.select %275, %293, %292 : vector<2x16xi1>, vector<2x16xf32>
    %cst_61 = arith.constant dense<0x7F800000> : vector<2xf32>
    %295 = vector.multi_reduction <minimumf>, %294, %cst_61 [1] : vector<2x16xf32> to vector<2xf32>
    %296 = vector.shape_cast %295 : vector<2xf32> to vector<2x1xf32>
    %297 = vector.broadcast %296 : vector<2x1xf32> to vector<2x16xf32>
    %298 = arith.cmpf oeq, %294, %297 : vector<2x16xf32>
    %c16_i32_62 = arith.constant 16 : i32
    %299 = vector.broadcast %c16_i32_62 : i32 to vector<2x16xi32>
    %300 = arith.select %298, %15, %299 : vector<2x16xi1>, vector<2x16xi32>
    %cst_63 = arith.constant dense<2147483647> : vector<2xi32>
    %301 = vector.multi_reduction <minsi>, %300, %cst_63 [1] : vector<2x16xi32> to vector<2xi32>
    %302 = vector.shape_cast %301 : vector<2xi32> to vector<2x1xi32>
    %303 = vector.broadcast %302 : vector<2x1xi32> to vector<2x16xi32>
    %304 = arith.cmpi eq, %15, %303 : vector<2x16xi32>
    %305 = arith.ori %275, %304 : vector<2x16xi1>
    %c1_i32_64 = arith.constant 1 : i32
    %306 = arith.subi %c10_i32, %c1_i32_64 : i32
    %307 = vector.broadcast %306 : i32 to vector<2x16xi32>
    %308 = arith.cmpi eq, %15, %307 : vector<2x16xi32>
    %cst_65 = arith.constant 0.000000e+00 : f32
    %309 = vector.shape_cast %296 : vector<2x1xf32> to vector<2x1xf32>
    %310 = vector.broadcast %309 : vector<2x1xf32> to vector<2x16xf32>
    %311 = vector.broadcast %cst_65 : f32 to vector<2x16xf32>
    %312 = arith.select %308, %310, %311 : vector<2x16xi1>, vector<2x16xf32>
    %313 = arith.addf %283, %312 : vector<2x16xf32>
    %314 = vector.shape_cast %302 : vector<2x1xi32> to vector<2x1x1xi32>
    %315 = vector.broadcast %314 : vector<2x1x1xi32> to vector<2x16x1xi32>
    %316 = arith.cmpi eq, %16, %315 : vector<2x16x1xi32>
    %317 = vector.shape_cast %316 : vector<2x16x1xi1> to vector<2x16x1xi1>
    %318 = vector.broadcast %317 : vector<2x16x1xi1> to vector<2x16x16xi1>
    %319 = vector.broadcast %cst_7 : f32 to vector<2x16x16xf32>
    %320 = arith.select %318, %14, %319 : vector<2x16x16xi1>, vector<2x16x16xf32>
    %cst_66 = arith.constant dense<0x7F800000> : vector<2x16xf32>
    %321 = vector.multi_reduction <minimumf>, %320, %cst_66 [1] : vector<2x16x16xf32> to vector<2x16xf32>
    %322 = arith.minimumf %292, %321 : vector<2x16xf32>
    %c11_i32 = arith.constant 11 : i32
    %323 = vector.broadcast %cst_7 : f32 to vector<2x16xf32>
    %324 = arith.select %305, %323, %322 : vector<2x16xi1>, vector<2x16xf32>
    %cst_67 = arith.constant dense<0x7F800000> : vector<2xf32>
    %325 = vector.multi_reduction <minimumf>, %324, %cst_67 [1] : vector<2x16xf32> to vector<2xf32>
    %326 = vector.shape_cast %325 : vector<2xf32> to vector<2x1xf32>
    %327 = vector.broadcast %326 : vector<2x1xf32> to vector<2x16xf32>
    %328 = arith.cmpf oeq, %324, %327 : vector<2x16xf32>
    %c16_i32_68 = arith.constant 16 : i32
    %329 = vector.broadcast %c16_i32_68 : i32 to vector<2x16xi32>
    %330 = arith.select %328, %15, %329 : vector<2x16xi1>, vector<2x16xi32>
    %cst_69 = arith.constant dense<2147483647> : vector<2xi32>
    %331 = vector.multi_reduction <minsi>, %330, %cst_69 [1] : vector<2x16xi32> to vector<2xi32>
    %332 = vector.shape_cast %331 : vector<2xi32> to vector<2x1xi32>
    %333 = vector.broadcast %332 : vector<2x1xi32> to vector<2x16xi32>
    %334 = arith.cmpi eq, %15, %333 : vector<2x16xi32>
    %335 = arith.ori %305, %334 : vector<2x16xi1>
    %c1_i32_70 = arith.constant 1 : i32
    %336 = arith.subi %c11_i32, %c1_i32_70 : i32
    %337 = vector.broadcast %336 : i32 to vector<2x16xi32>
    %338 = arith.cmpi eq, %15, %337 : vector<2x16xi32>
    %cst_71 = arith.constant 0.000000e+00 : f32
    %339 = vector.shape_cast %326 : vector<2x1xf32> to vector<2x1xf32>
    %340 = vector.broadcast %339 : vector<2x1xf32> to vector<2x16xf32>
    %341 = vector.broadcast %cst_71 : f32 to vector<2x16xf32>
    %342 = arith.select %338, %340, %341 : vector<2x16xi1>, vector<2x16xf32>
    %343 = arith.addf %313, %342 : vector<2x16xf32>
    %344 = vector.shape_cast %332 : vector<2x1xi32> to vector<2x1x1xi32>
    %345 = vector.broadcast %344 : vector<2x1x1xi32> to vector<2x16x1xi32>
    %346 = arith.cmpi eq, %16, %345 : vector<2x16x1xi32>
    %347 = vector.shape_cast %346 : vector<2x16x1xi1> to vector<2x16x1xi1>
    %348 = vector.broadcast %347 : vector<2x16x1xi1> to vector<2x16x16xi1>
    %349 = vector.broadcast %cst_7 : f32 to vector<2x16x16xf32>
    %350 = arith.select %348, %14, %349 : vector<2x16x16xi1>, vector<2x16x16xf32>
    %cst_72 = arith.constant dense<0x7F800000> : vector<2x16xf32>
    %351 = vector.multi_reduction <minimumf>, %350, %cst_72 [1] : vector<2x16x16xf32> to vector<2x16xf32>
    %352 = arith.minimumf %322, %351 : vector<2x16xf32>
    %c12_i32 = arith.constant 12 : i32
    %353 = vector.broadcast %cst_7 : f32 to vector<2x16xf32>
    %354 = arith.select %335, %353, %352 : vector<2x16xi1>, vector<2x16xf32>
    %cst_73 = arith.constant dense<0x7F800000> : vector<2xf32>
    %355 = vector.multi_reduction <minimumf>, %354, %cst_73 [1] : vector<2x16xf32> to vector<2xf32>
    %356 = vector.shape_cast %355 : vector<2xf32> to vector<2x1xf32>
    %357 = vector.broadcast %356 : vector<2x1xf32> to vector<2x16xf32>
    %358 = arith.cmpf oeq, %354, %357 : vector<2x16xf32>
    %c16_i32_74 = arith.constant 16 : i32
    %359 = vector.broadcast %c16_i32_74 : i32 to vector<2x16xi32>
    %360 = arith.select %358, %15, %359 : vector<2x16xi1>, vector<2x16xi32>
    %cst_75 = arith.constant dense<2147483647> : vector<2xi32>
    %361 = vector.multi_reduction <minsi>, %360, %cst_75 [1] : vector<2x16xi32> to vector<2xi32>
    %362 = vector.shape_cast %361 : vector<2xi32> to vector<2x1xi32>
    %363 = vector.broadcast %362 : vector<2x1xi32> to vector<2x16xi32>
    %364 = arith.cmpi eq, %15, %363 : vector<2x16xi32>
    %365 = arith.ori %335, %364 : vector<2x16xi1>
    %c1_i32_76 = arith.constant 1 : i32
    %366 = arith.subi %c12_i32, %c1_i32_76 : i32
    %367 = vector.broadcast %366 : i32 to vector<2x16xi32>
    %368 = arith.cmpi eq, %15, %367 : vector<2x16xi32>
    %cst_77 = arith.constant 0.000000e+00 : f32
    %369 = vector.shape_cast %356 : vector<2x1xf32> to vector<2x1xf32>
    %370 = vector.broadcast %369 : vector<2x1xf32> to vector<2x16xf32>
    %371 = vector.broadcast %cst_77 : f32 to vector<2x16xf32>
    %372 = arith.select %368, %370, %371 : vector<2x16xi1>, vector<2x16xf32>
    %373 = arith.addf %343, %372 : vector<2x16xf32>
    %374 = vector.shape_cast %362 : vector<2x1xi32> to vector<2x1x1xi32>
    %375 = vector.broadcast %374 : vector<2x1x1xi32> to vector<2x16x1xi32>
    %376 = arith.cmpi eq, %16, %375 : vector<2x16x1xi32>
    %377 = vector.shape_cast %376 : vector<2x16x1xi1> to vector<2x16x1xi1>
    %378 = vector.broadcast %377 : vector<2x16x1xi1> to vector<2x16x16xi1>
    %379 = vector.broadcast %cst_7 : f32 to vector<2x16x16xf32>
    %380 = arith.select %378, %14, %379 : vector<2x16x16xi1>, vector<2x16x16xf32>
    %cst_78 = arith.constant dense<0x7F800000> : vector<2x16xf32>
    %381 = vector.multi_reduction <minimumf>, %380, %cst_78 [1] : vector<2x16x16xf32> to vector<2x16xf32>
    %382 = arith.minimumf %352, %381 : vector<2x16xf32>
    %c13_i32 = arith.constant 13 : i32
    %383 = vector.broadcast %cst_7 : f32 to vector<2x16xf32>
    %384 = arith.select %365, %383, %382 : vector<2x16xi1>, vector<2x16xf32>
    %cst_79 = arith.constant dense<0x7F800000> : vector<2xf32>
    %385 = vector.multi_reduction <minimumf>, %384, %cst_79 [1] : vector<2x16xf32> to vector<2xf32>
    %386 = vector.shape_cast %385 : vector<2xf32> to vector<2x1xf32>
    %387 = vector.broadcast %386 : vector<2x1xf32> to vector<2x16xf32>
    %388 = arith.cmpf oeq, %384, %387 : vector<2x16xf32>
    %c16_i32_80 = arith.constant 16 : i32
    %389 = vector.broadcast %c16_i32_80 : i32 to vector<2x16xi32>
    %390 = arith.select %388, %15, %389 : vector<2x16xi1>, vector<2x16xi32>
    %cst_81 = arith.constant dense<2147483647> : vector<2xi32>
    %391 = vector.multi_reduction <minsi>, %390, %cst_81 [1] : vector<2x16xi32> to vector<2xi32>
    %392 = vector.shape_cast %391 : vector<2xi32> to vector<2x1xi32>
    %393 = vector.broadcast %392 : vector<2x1xi32> to vector<2x16xi32>
    %394 = arith.cmpi eq, %15, %393 : vector<2x16xi32>
    %395 = arith.ori %365, %394 : vector<2x16xi1>
    %c1_i32_82 = arith.constant 1 : i32
    %396 = arith.subi %c13_i32, %c1_i32_82 : i32
    %397 = vector.broadcast %396 : i32 to vector<2x16xi32>
    %398 = arith.cmpi eq, %15, %397 : vector<2x16xi32>
    %cst_83 = arith.constant 0.000000e+00 : f32
    %399 = vector.shape_cast %386 : vector<2x1xf32> to vector<2x1xf32>
    %400 = vector.broadcast %399 : vector<2x1xf32> to vector<2x16xf32>
    %401 = vector.broadcast %cst_83 : f32 to vector<2x16xf32>
    %402 = arith.select %398, %400, %401 : vector<2x16xi1>, vector<2x16xf32>
    %403 = arith.addf %373, %402 : vector<2x16xf32>
    %404 = vector.shape_cast %392 : vector<2x1xi32> to vector<2x1x1xi32>
    %405 = vector.broadcast %404 : vector<2x1x1xi32> to vector<2x16x1xi32>
    %406 = arith.cmpi eq, %16, %405 : vector<2x16x1xi32>
    %407 = vector.shape_cast %406 : vector<2x16x1xi1> to vector<2x16x1xi1>
    %408 = vector.broadcast %407 : vector<2x16x1xi1> to vector<2x16x16xi1>
    %409 = vector.broadcast %cst_7 : f32 to vector<2x16x16xf32>
    %410 = arith.select %408, %14, %409 : vector<2x16x16xi1>, vector<2x16x16xf32>
    %cst_84 = arith.constant dense<0x7F800000> : vector<2x16xf32>
    %411 = vector.multi_reduction <minimumf>, %410, %cst_84 [1] : vector<2x16x16xf32> to vector<2x16xf32>
    %412 = arith.minimumf %382, %411 : vector<2x16xf32>
    %c14_i32 = arith.constant 14 : i32
    %413 = vector.broadcast %cst_7 : f32 to vector<2x16xf32>
    %414 = arith.select %395, %413, %412 : vector<2x16xi1>, vector<2x16xf32>
    %cst_85 = arith.constant dense<0x7F800000> : vector<2xf32>
    %415 = vector.multi_reduction <minimumf>, %414, %cst_85 [1] : vector<2x16xf32> to vector<2xf32>
    %416 = vector.shape_cast %415 : vector<2xf32> to vector<2x1xf32>
    %417 = vector.broadcast %416 : vector<2x1xf32> to vector<2x16xf32>
    %418 = arith.cmpf oeq, %414, %417 : vector<2x16xf32>
    %c16_i32_86 = arith.constant 16 : i32
    %419 = vector.broadcast %c16_i32_86 : i32 to vector<2x16xi32>
    %420 = arith.select %418, %15, %419 : vector<2x16xi1>, vector<2x16xi32>
    %cst_87 = arith.constant dense<2147483647> : vector<2xi32>
    %421 = vector.multi_reduction <minsi>, %420, %cst_87 [1] : vector<2x16xi32> to vector<2xi32>
    %422 = vector.shape_cast %421 : vector<2xi32> to vector<2x1xi32>
    %423 = vector.broadcast %422 : vector<2x1xi32> to vector<2x16xi32>
    %424 = arith.cmpi eq, %15, %423 : vector<2x16xi32>
    %425 = arith.ori %395, %424 : vector<2x16xi1>
    %c1_i32_88 = arith.constant 1 : i32
    %426 = arith.subi %c14_i32, %c1_i32_88 : i32
    %427 = vector.broadcast %426 : i32 to vector<2x16xi32>
    %428 = arith.cmpi eq, %15, %427 : vector<2x16xi32>
    %cst_89 = arith.constant 0.000000e+00 : f32
    %429 = vector.shape_cast %416 : vector<2x1xf32> to vector<2x1xf32>
    %430 = vector.broadcast %429 : vector<2x1xf32> to vector<2x16xf32>
    %431 = vector.broadcast %cst_89 : f32 to vector<2x16xf32>
    %432 = arith.select %428, %430, %431 : vector<2x16xi1>, vector<2x16xf32>
    %433 = arith.addf %403, %432 : vector<2x16xf32>
    %434 = vector.shape_cast %422 : vector<2x1xi32> to vector<2x1x1xi32>
    %435 = vector.broadcast %434 : vector<2x1x1xi32> to vector<2x16x1xi32>
    %436 = arith.cmpi eq, %16, %435 : vector<2x16x1xi32>
    %437 = vector.shape_cast %436 : vector<2x16x1xi1> to vector<2x16x1xi1>
    %438 = vector.broadcast %437 : vector<2x16x1xi1> to vector<2x16x16xi1>
    %439 = vector.broadcast %cst_7 : f32 to vector<2x16x16xf32>
    %440 = arith.select %438, %14, %439 : vector<2x16x16xi1>, vector<2x16x16xf32>
    %cst_90 = arith.constant dense<0x7F800000> : vector<2x16xf32>
    %441 = vector.multi_reduction <minimumf>, %440, %cst_90 [1] : vector<2x16x16xf32> to vector<2x16xf32>
    %442 = arith.minimumf %412, %441 : vector<2x16xf32>
    %c15_i32 = arith.constant 15 : i32
    %443 = vector.broadcast %cst_7 : f32 to vector<2x16xf32>
    %444 = arith.select %425, %443, %442 : vector<2x16xi1>, vector<2x16xf32>
    %cst_91 = arith.constant dense<0x7F800000> : vector<2xf32>
    %445 = vector.multi_reduction <minimumf>, %444, %cst_91 [1] : vector<2x16xf32> to vector<2xf32>
    %446 = vector.shape_cast %445 : vector<2xf32> to vector<2x1xf32>
    %447 = vector.broadcast %446 : vector<2x1xf32> to vector<2x16xf32>
    %448 = arith.cmpf oeq, %444, %447 : vector<2x16xf32>
    %c16_i32_92 = arith.constant 16 : i32
    %449 = vector.broadcast %c16_i32_92 : i32 to vector<2x16xi32>
    %450 = arith.select %448, %15, %449 : vector<2x16xi1>, vector<2x16xi32>
    %cst_93 = arith.constant dense<2147483647> : vector<2xi32>
    %451 = vector.multi_reduction <minsi>, %450, %cst_93 [1] : vector<2x16xi32> to vector<2xi32>
    %452 = vector.shape_cast %451 : vector<2xi32> to vector<2x1xi32>
    %453 = vector.broadcast %452 : vector<2x1xi32> to vector<2x16xi32>
    %454 = arith.cmpi eq, %15, %453 : vector<2x16xi32>
    %455 = arith.ori %425, %454 : vector<2x16xi1>
    %c1_i32_94 = arith.constant 1 : i32
    %456 = arith.subi %c15_i32, %c1_i32_94 : i32
    %457 = vector.broadcast %456 : i32 to vector<2x16xi32>
    %458 = arith.cmpi eq, %15, %457 : vector<2x16xi32>
    %cst_95 = arith.constant 0.000000e+00 : f32
    %459 = vector.shape_cast %446 : vector<2x1xf32> to vector<2x1xf32>
    %460 = vector.broadcast %459 : vector<2x1xf32> to vector<2x16xf32>
    %461 = vector.broadcast %cst_95 : f32 to vector<2x16xf32>
    %462 = arith.select %458, %460, %461 : vector<2x16xi1>, vector<2x16xf32>
    %463 = arith.addf %433, %462 : vector<2x16xf32>
    %464 = vector.shape_cast %452 : vector<2x1xi32> to vector<2x1x1xi32>
    %465 = vector.broadcast %464 : vector<2x1x1xi32> to vector<2x16x1xi32>
    %466 = arith.cmpi eq, %16, %465 : vector<2x16x1xi32>
    %467 = vector.shape_cast %466 : vector<2x16x1xi1> to vector<2x16x1xi1>
    %468 = vector.broadcast %467 : vector<2x16x1xi1> to vector<2x16x16xi1>
    %469 = vector.broadcast %cst_7 : f32 to vector<2x16x16xf32>
    %470 = arith.select %468, %14, %469 : vector<2x16x16xi1>, vector<2x16x16xf32>
    %cst_96 = arith.constant dense<0x7F800000> : vector<2x16xf32>
    %471 = vector.multi_reduction <minimumf>, %470, %cst_96 [1] : vector<2x16x16xf32> to vector<2x16xf32>
    %472 = arith.minimumf %442, %471 : vector<2x16xf32>
    %c15_i32_97 = arith.constant 15 : i32
    %c15_i32_98 = arith.constant 15 : i32
    %473 = vector.broadcast %c15_i32_98 : i32 to vector<2x16xi32>
    %474 = arith.cmpi slt, %15, %473 : vector<2x16xi32>
    %475 = vector.shape_cast %463 : vector<2x16xf32> to vector<2x16x1xf32>
    %476 = vector.shape_cast %463 : vector<2x16xf32> to vector<2x1x16xf32>
    %c15_i32_99 = arith.constant 15 : i32
    %477 = vector.broadcast %c15_i32_99 : i32 to vector<2x16x1xi32>
    %478 = arith.cmpi slt, %16, %477 : vector<2x16x1xi32>
    %479 = vector.broadcast %475 : vector<2x16x1xf32> to vector<2x16x16xf32>
    %480 = vector.broadcast %476 : vector<2x1x16xf32> to vector<2x16x16xf32>
    %481 = arith.cmpf ogt, %479, %480 : vector<2x16x16xf32>
    %482 = vector.broadcast %475 : vector<2x16x1xf32> to vector<2x16x16xf32>
    %483 = vector.broadcast %476 : vector<2x1x16xf32> to vector<2x16x16xf32>
    %484 = arith.cmpf oeq, %482, %483 : vector<2x16x16xf32>
    %485 = vector.broadcast %16 : vector<2x16x1xi32> to vector<2x16x16xi32>
    %486 = vector.broadcast %17 : vector<2x1x16xi32> to vector<2x16x16xi32>
    %487 = arith.cmpi slt, %485, %486 : vector<2x16x16xi32>
    %488 = arith.andi %484, %487 : vector<2x16x16xi1>
    %489 = arith.ori %481, %488 : vector<2x16x16xi1>
    %490 = vector.broadcast %478 : vector<2x16x1xi1> to vector<2x16x16xi1>
    %491 = arith.andi %489, %490 : vector<2x16x16xi1>
    %492 = arith.extui %491 : vector<2x16x16xi1> to vector<2x16x16xi32>
    %cst_100 = arith.constant dense<0> : vector<2x16xi32>
    %493 = vector.multi_reduction <add>, %492, %cst_100 [1] : vector<2x16x16xi32> to vector<2x16xi32>
    %c36_i32 = arith.constant 36 : i32
    %494 = vector.broadcast %c36_i32 : i32 to vector<2x16xi32>
    %495 = arith.select %474, %493, %494 : vector<2x16xi1>, vector<2x16xi32>
    %496 = tpu.iota {dimensions = array<i32: 1>} : vector<2x20x1xi32>
    %497 = vector.shape_cast %495 : vector<2x16xi32> to vector<2x1x16xi32>
    %498 = vector.broadcast %496 : vector<2x20x1xi32> to vector<2x20x16xi32>
    %499 = vector.broadcast %497 : vector<2x1x16xi32> to vector<2x20x16xi32>
    %500 = arith.cmpi eq, %498, %499 : vector<2x20x16xi32>
    %cst_101 = arith.constant 0.000000e+00 : f32
    %501 = vector.shape_cast %476 : vector<2x1x16xf32> to vector<2x1x16xf32>
    %502 = vector.broadcast %501 : vector<2x1x16xf32> to vector<2x20x16xf32>
    %503 = vector.broadcast %cst_101 : f32 to vector<2x20x16xf32>
    %504 = arith.select %500, %502, %503 : vector<2x20x16xi1>, vector<2x20x16xf32>
    %cst_102 = arith.constant dense<0.000000e+00> : vector<2x20xf32>
    %505 = vector.multi_reduction <add>, %504, %cst_102 [2] : vector<2x20x16xf32> to vector<2x20xf32>
    %506 = math.sqrt %505 : vector<2x20xf32>
    %507 = tpu.iota {dimensions = array<i32: 0>} : vector<20x80xi32>
    %508 = tpu.iota {dimensions = array<i32: 1>} : vector<20x80xi32>
    %c2_i32_103 = arith.constant 2 : i32
    %509 = vector.broadcast %c2_i32_103 : i32 to vector<20x80xi32>
    %510 = arith.muli %509, %507 : vector<20x80xi32>
    %c1_i32_104 = arith.constant 1 : i32
    %511 = vector.broadcast %c1_i32_104 : i32 to vector<20x80xi32>
    %512 = arith.addi %510, %511 : vector<20x80xi32>
    %513 = arith.cmpi eq, %508, %512 : vector<20x80xi32>
    %514 = arith.extui %513 : vector<20x80xi1> to vector<20x80xi32>
    %515 = arith.sitofp %514 : vector<20x80xi32> to vector<20x80xf32>
    %cst_105 = arith.constant dense<0.000000e+00> : vector<2x80xf32>
    %516 = tpu.matmul %506, %515, %cst_105 {dimension_numbers = #tpu.dot_dimension_numbers<[1], [0], [0], [1], [0, 0, 1, 1], [], []>} : vector<2x20xf32>, vector<20x80xf32>, vector<2x80xf32> -> vector<2x80xf32>
    %c0_106 = arith.constant 0 : index
    %c0_107 = arith.constant 0 : index
    %c0_108 = arith.constant 0 : index
    %517 = vector.load %arg4[%c0_106, %c0_107, %c0_108] : memref<1x2x80xf32, #tpu.memory_space<vmem>>, vector<1x2x80xf32>
    %518 = vector.shape_cast %517 : vector<1x2x80xf32> to vector<2x80xf32>
    %519 = vector.shape_cast %516 : vector<2x80xf32> to vector<1x2x80xf32>
    tpu.vector_store %arg4[%c0_106, %c0_107, %c0_108], %519 {strides = array<i32>} : memref<1x2x80xf32, #tpu.memory_space<vmem>>, vector<1x2x80xf32>,
    %c0_109 = arith.constant 0 : index
    %c0_110 = arith.constant 0 : index
    %520 = vector.load %arg2[%c0_109, %c0_110] : memref<10x1xf32, #tpu.memory_space<vmem>>, vector<10x1xf32>
    %521 = vector.shape_cast %520 : vector<10x1xf32> to vector<1x10x1xf32>
    %522 = vector.broadcast %476 : vector<2x1x16xf32> to vector<2x10x16xf32>
    %523 = vector.broadcast %521 : vector<1x10x1xf32> to vector<2x10x16xf32>
    %524 = arith.cmpf ole, %522, %523 : vector<2x10x16xf32>
    %c15_i32_111 = arith.constant 15 : i32
    %525 = vector.broadcast %c15_i32_111 : i32 to vector<2x1x16xi32>
    %526 = arith.cmpi slt, %17, %525 : vector<2x1x16xi32>
    %527 = vector.broadcast %526 : vector<2x1x16xi1> to vector<2x10x16xi1>
    %528 = arith.andi %524, %527 : vector<2x10x16xi1>
    %529 = arith.extui %528 : vector<2x10x16xi1> to vector<2x10x16xi32>
    %530 = arith.sitofp %529 : vector<2x10x16xi32> to vector<2x10x16xf32>
    %cst_112 = arith.constant dense<0.000000e+00> : vector<2x10xf32>
    %531 = vector.multi_reduction <add>, %530, %cst_112 [2] : vector<2x10x16xf32> to vector<2x10xf32>
    %cst_113 = arith.constant 1.600000e+01 : f32
    %532 = vector.broadcast %cst_113 : f32 to vector<2x10xf32>
    %533 = arith.subf %532, %531 : vector<2x10xf32>
    %c0_114 = arith.constant 0 : index
    %c0_115 = arith.constant 0 : index
    %534 = vector.load %arg3[%c0_114, %c0_115] : memref<10x40xf32, #tpu.memory_space<vmem>>, vector<10x40xf32>
    %cst_116 = arith.constant dense<0.000000e+00> : vector<2x40xf32>
    %535 = tpu.matmul %533, %534, %cst_116 {dimension_numbers = #tpu.dot_dimension_numbers<[1], [0], [0], [1], [0, 0, 1, 1], [], []>} : vector<2x10xf32>, vector<10x40xf32>, vector<2x40xf32> -> vector<2x40xf32>
    %c0_117 = arith.constant 0 : index
    %c0_118 = arith.constant 0 : index
    %c0_119 = arith.constant 0 : index
    %536 = vector.load %arg5[%c0_117, %c0_118, %c0_119] : memref<1x2x40xf32, #tpu.memory_space<vmem>>, vector<1x2x40xf32>
    %537 = vector.shape_cast %536 : vector<1x2x40xf32> to vector<2x40xf32>
    %538 = vector.shape_cast %535 : vector<2x40xf32> to vector<1x2x40xf32>
    tpu.vector_store %arg5[%c0_117, %c0_118, %c0_119], %538 {strides = array<i32>} : memref<1x2x40xf32, #tpu.memory_space<vmem>>, vector<1x2x40xf32>,
    return
  }
  func.func @transform_0(%arg0: i32) -> (i32, i32, i32, i32) {
    %c0_i32 = arith.constant 0 : i32
    %c0_i32_0 = arith.constant 0 : i32
    %c0_i32_1 = arith.constant 0 : i32
    %c0_i32_2 = arith.constant 0 : i32
    return %arg0, %c0_i32, %c0_i32_0, %c0_i32_1 : i32, i32, i32, i32
  }
  func.func @transform_1(%arg0: i32) -> (i32, i32) {
    %c0_i32 = arith.constant 0 : i32
    %c0_i32_0 = arith.constant 0 : i32
    %c0_i32_1 = arith.constant 0 : i32
    return %c0_i32, %c0_i32_0 : i32, i32
  }
  func.func @transform_2(%arg0: i32) -> (i32, i32) {
    %c0_i32 = arith.constant 0 : i32
    %c0_i32_0 = arith.constant 0 : i32
    %c0_i32_1 = arith.constant 0 : i32
    return %c0_i32, %c0_i32_0 : i32, i32
  }
  func.func @transform_3(%arg0: i32) -> (i32, i32, i32) {
    %c0_i32 = arith.constant 0 : i32
    %c0_i32_0 = arith.constant 0 : i32
    %c0_i32_1 = arith.constant 0 : i32
    return %arg0, %c0_i32, %c0_i32_0 : i32, i32, i32
  }
  func.func @transform_4(%arg0: i32) -> (i32, i32, i32) {
    %c0_i32 = arith.constant 0 : i32
    %c0_i32_0 = arith.constant 0 : i32
    %c0_i32_1 = arith.constant 0 : i32
    return %arg0, %c0_i32, %c0_i32_0 : i32, i32, i32
  }
}

</mosaic_0001>

<bundles_post_ra>
// kernel: tpu_custom_call.1
= control target key start
LH: loop header
LB: loop body
LE: loop exit
PB: predicated region body
PF: predicated region fallthrough
CT: control target
= control target key end

     0   :  { %10 = vsyncpa [#allocation3], 0  ;;  %s3225_s0 = inlined_call_operand.vmem [shape: f32[2,2,16,8], index: 0, kind: input, shape index: {}]   ;;  %s3226_s1 = inlined_call_operand.vmem [shape: f32[10,1], index: 1, kind: input, shape index: {}]   ;;  %s3227_s2 = inlined_call_operand.vmem [shape: f32[10,40], index: 2, kind: input, shape index: {}]   ;;  %s3228_s3 = inlined_call_operand.hbm [shape: f32[2,2,80], index: 3, kind: output, shape index: {0}]   ;;  %s3229_s4 = inlined_call_operand.hbm [shape: f32[2,2,40], index: 4, kind: output, shape index: {1}]  }
   0x1   :  { %12 = vsyncpa [#allocation3 + $0x1], 0 }
   0x2   :  { %13 = vsyncpa [#allocation5], 0 }
   0x3   :  { %15 = vsyncpa [#allocation5 + $0x1], 0  ;;  %s2431_s15 = smov 0   ;;  %s2433_s16 = smov 0  }
   0x4   :  { %s2435_s17 = smov 0   ;;  %s2437_s18 = smov 0  }
   0x5 LB: > { %s2452_s19 = sadd.s32 4294967295, %s2395_s18   ;;  %s2136_s20 = sadd.s32 4294967294, %s2395_s18   ;;  %s2395_s18 = sphi %s2437_s18, %s3285_s18   ;;  %s2391_s17 = sphi %s2435_s17, %s3284_s17   ;;  %s2387_s16 = sphi %s2433_s16, %s3283_s16   ;;  %s2383_s15 = sphi %s2431_s15, %s3282_s15  }
   0x6   : > { %s2456_s21 = sadd.s32 1, %s2395_s18   ;;  %s96_s22 = sadd.s32 1, %s2391_s17 }
   0x7   : > { %s93_s23 = ssub.s32 %s2395_s18, %s2456_s21  ;;  %p106_p0 = scmp.ne.s32.totalorder %s2391_s17, %s2387_s16 }
   0x8   : > { %p94_p1 = scmp.eq.s32.totalorder %s93_s23, 0  ;;  %p107_p2 = scmp.eq.s32.totalorder %s2452_s19, 1 }
   0x9   : > { %p112_p3 = scmp.ne.s32.totalorder %s2387_s16, %s2383_s15  ;;  %p113_p4 = scmp.eq.s32.totalorder %s2136_s20, 1 }
   0xa   : > { %s2467_s24 = scalar_select %p94_p1, %s2391_s17, %s96_s22  }
   0xb   : > { %p2469_p5 = por %p107_p2, %p106_p0  ;;  %p2473_p6 = por %p113_p4, %p112_p3 }
   0xc   : > { %p2139_p7 = scmp.ge.s32.totalorder %s2395_s18, 1  ;;  %p171_p8 = scmp.lt.s32.totalorder %s2395_s18, 3 }
   0xe   : > { %p172_p9 = pnand %p2139_p7, %p171_p8 }
   0xf   : > { %p202_p10 = scmp.lt.s32.totalorder (!%p172_p9), %s2452_s19, 1  ;;  %vm215_vm0 = vcmask (!%p172_p9), 64512   ;;  %v394_v15 = vlaneseq (!%p172_p9)  ;;  %vm3230_vm2 = vcmask (!%p172_p9), 130112   ;;  %vm3232_vm3 = vcmask (!%p172_p9), 1041409   ;;  %s3136_s14 = sand.u32 (!%p172_p9), 1, %s2387_s16  }
  0x10   : > { %175 = sbr.rel (%p172_p9) target bundleno = 7503 (0x1d4f), region = 32  ;;  %vm2486_vm1 = vmpackc.low (!%p172_p9), %vm215_vm0, %vm215_vm0  ;;  %vm3231_vm5 = vcmask (!%p172_p9), 123904   ;;  %vm3233_vm8 = vcmask (!%p172_p9), 130048   ;;  %s2140_s20 = sshll.u32 (!%p172_p9), %s3136_s14, 1 }
  0x11   : > { %v2506_v16 = vand.u32 (!%p172_p9), 127, %v394_v15  ;;  %v2508_v19 = vshrl.u32 (!%p172_p9), %v394_v15, 7  ;;  %s2167_s22 = sshll.u32 (!%p172_p9), %s2452_s19, 5  ;;  %s201_s23 = scalar_lea.vmem (!%p172_p9), [#allocation4], %s2140_s20 }
  0x12   : > { %s3145_s30 = scalar_lea.hbm (!%p172_p9), %s3229_s4, %s2167_s22  ;;  %s2019_s7 = scalar_lea.sflag (!%p172_p9), [#allocation5], %s3136_s14 }
  0x13   : > { %v400_v20 = vadd.s32 (!%p172_p9), 4294967288, %v2506_v16  ;;  %v2513_v22 = vsub.s32 (!%p172_p9), %v2506_v16, %v2508_v19  ;;  %vm456_vm4 = vcmp.eq.s32.totalorder (!%p172_p9), %v2506_v16, 0  ;;  %s2404_s9 = smov (!%p172_p9), [#allocation4]  }
  0x14   : > { %s2305_s10 = sshll.u32 (!%p172_p9), %s2404_s9, 4  ;;  %s2306_s10 = int_to_ptr.vmem [resolvable:$false] %s2305_s10 }
  0x15   : > { %v2516_v23 = vsub.s32 (!%p172_p9), %v400_v20, %v2508_v19  ;;  %s2307_s11 = scalar_lea.vmem (!%p172_p9), %s2306_s10, 64 }
  0x17   : > { %s203_s27 = scalar_select %p202_p10, %s2452_s19, 1 }
  0x19   : > { %s2171_s28 = sshll.u32 %s203_s27, 5  ;;  %s2045_s27 = sshll.u32 %s201_s23, 4  ;;  %s3147_s27 = int_to_ptr.vmem [resolvable:$true] %s2045_s27 }
  0x1a   : > { %s206_s5 = scalar_lea.vmem %s3225_s0, %s2171_s28  ;;  %s2301_s8 = scalar_lea.vmem %s3147_s27, 32 }
  0x1b   : > { %v207_v1 = vld [vmem:[%s206_s5] sm:$0xff]  ;;  %v208_v2 = vld [vmem:[%s206_s5 + $0x8] sm:$0xff]  ;;  %v209_v3 = vld [vmem:[%s206_s5 + $0x10] sm:$0xff]  ;;  %p2302_p11 = scmp.ne.s32.totalorder %s3147_s27, %s2301_s8  ;;  %p2308_p0 = scmp.lt.s32.totalorder %s3147_s27, %s2306_s10 }
  0x1c   : > { %v2217_v4 = vpack.c.bf16 %v208_v2, %v207_v1  ;;  %v210_v5 = vld [vmem:[%s206_s5 + $0x18] sm:$0xff]  ;;  %2191 = vmatprep.mubr.msk.f32.mxu0 %vm215_vm0, %v207_v1  ;;  %2198 = vmatprep.mubr.msk.f32.mxu1 %vm215_vm0, %v209_v3  ;;  %v213_v6 = vmul.f32 %v209_v3, %v209_v3  ;;  %v211_v7 = vmul.f32 %v207_v1, %v207_v1  ;;  %v2541_v1 = vsub.s32 0, %v2508_v19  ;;  %s3149_s5 = scalar_lea.vmem [#allocation2], %s2140_s20  ;;  %p2309_p1 = scmp.lt.s32.totalorder %s2307_s11, %s2301_s8 }
  0x1d   : > { %v2223_v8 = vpack.c.bf16 %v210_v5, %v209_v3  ;;  %v214_v9 = vmul.f32 %v210_v5, %v210_v5  ;;  %v212_v12 = vmul.f32 %v208_v2, %v208_v2  ;;  %s2032_s6 = sshll.u32 %s3149_s5, 4  ;;  %p2303_p12 = pnand %p2302_p11, %p2469_p5  ;;  %s3183_s6 = int_to_ptr.vmem [resolvable:$true] %s2032_s6 }
  0x1e   : > { %2219 = vmatprep.subr.msk.bf16.mxu0 %vm2486_vm1, %v2217_v4  ;;  %v222_v10 = vsel %vm215_vm0, %v213_v6, 0.0  ;;  %v216_v11 = vsel %vm215_vm0, %v211_v7, 0.0  ;;  %p2310_p2 = por %p2309_p1, %p2308_p0 }
  0x1f   : > { %2225 = vmatprep.subr.msk.bf16.mxu1 %vm2486_vm1, %v2223_v8  ;;  %2222 = vmatpush3.bf16.xpose.msk.msra.mxu0 %vm2486_vm1, %v2217_v4  ;;  %v225_v13 = vsel %vm215_vm0, %v214_v9, 0.0  ;;  %v219_v14 = vsel %vm215_vm0, %v212_v12, 0.0  ;;  %v2547_v4 = vadd.s32 8, %v2508_v19  ;;  %p2304_p13 = pneg %p2303_p12 }
  0x20   : > { %2228 = vmatpush3.bf16.xpose.msk.msra.mxu1 %vm2486_vm1, %v2223_v8  ;;  %223 = vadd.xlane.f32.xlu0 %v222_v10 }
  0x21   : > { %217 = vadd.xlane.f32.xlu1 %v216_v11  ;;  %p2311_p3 = pnand %p2310_p2, %p2304_p13 }
  0x24   : > { %226 = vadd.xlane.f32.xlu0 %v225_v13 }
  0x25   : > { %220 = vadd.xlane.f32.xlu1 %v219_v14 }
  0x26   : > { %2192 = vmatmul.mubr.msk.f32.vlgmr.msra.gmra.mrb[0].mxu0 %vm215_vm0, %v208_v2  ;;  %v2544_v2 = vsub.s32 1, %v2508_v19 }
  0x27   : > { %2199 = vmatmul.mubr.msk.f32.vlgmr.msra.gmra.mrb[0].mxu1 %vm215_vm0, %v210_v5 }
  0xad   : > { %v224_v18 = vpop.xlane.xlu0 %223 }
  0xae   : > { %v218_v17 = vpop.xlane.xlu1 %217  ;;  %v410_v27 = vrot.slane %v224_v18, %v2513_v22 }
  0xaf   : > { %v399_v25 = vrot.slane %v218_v17, %v2513_v22 }
  0xb1   : > { %v227_v24 = vpop.xlane.xlu0 %226 }
  0xb2   : > { %v221_v21 = vpop.xlane.xlu1 %220  ;;  %v414_v28 = vrot.slane %v227_v24, %v2516_v23 }
  0xb3   : > { %v404_v26 = vrot.slane %v221_v21, %v2516_v23 }
  0xb4   : > { %v415_v31 = vsel %vm3230_vm2, %v414_v28, %v410_v27 }
  0xb5   : > { %v406_v29 = vsel %vm3230_vm2, %v404_v26, %v399_v25  ;;  %v440_v36 = vadd.f32 %v415_v31, %v227_v24  ;;  %v439_v40 = vadd.f32 %v415_v31, %v224_v18 }
  0xb6   : > { %v438_v30 = vadd.f32 %v406_v29, %v221_v21  ;;  %v437_v41 = vadd.f32 %v406_v29, %v218_v17 }
  0xf9   : > { %v2193_v32 = vpop.f32.mrb[0].mxu0 }
  0xfa   : > { %v442_v33 = vmul.f32 2.0, %v2193_v32  ;;  %v2200_v34 = vpop.f32.mrb[0].mxu1  ;;  %v300_v35 = vpop.f32.mrb[1].mxu0 }
  0xfb   : > { %v444_v37 = vmul.f32 2.0, %v2200_v34  ;;  %v441_v38 = vmul.f32 2.0, %v300_v35  ;;  %v381_v39 = vpop.f32.mrb[1].mxu1 }
  0xfc   : > { %v446_v42 = vsub.f32 %v438_v30, %v442_v33  ;;  %v443_v43 = vmul.f32 2.0, %v381_v39 }
  0xfd   : > { %v448_v44 = vsub.f32 %v440_v36, %v444_v37  ;;  %v445_v45 = vsub.f32 %v437_v41, %v441_v38 }
  0xfe   : > { %v447_v46 = vsub.f32 %v439_v40, %v443_v43  ;;  %v2551_v8 = vmax.f32 %v446_v42, 0.0 }
  0xff   : > { %v2526_v48 = vmax.f32 %v445_v45, 0.0  ;;  %v2553_v9 = vmax.f32 %v448_v44, 0.0 }
 0x100   : > { %v2524_v47 = vmax.f32 %v447_v46, 0.0 }
 0x102   : > { %v459_v49 = vrot.slane %v2524_v47, 7 }
 0x104   : > { %v460_v50 = vsel %vm3232_vm3, %v459_v49, %v2526_v48 }
 0x105   : > { %v462_v51 = vsel %vm456_vm4, 1e+30, %v460_v50 }
 0x106   : > { %v464_v52 = vsel %vm3231_vm5, %v462_v51, inf }
 0x107   : > { %465 = vmin.xlane.f32.xlu0 %v464_v52 }
 0x194   : > { %v2535_v53 = vpop.xlane.xlu0 %465 }
 0x195   : > { %vm467_vm6 = vcmp.eq.f32.partialorder %v462_v51, %v2535_v53 }
 0x196   : > { %v468_v54 = vsel %vm467_vm6, %v2506_v16, 16 }
 0x197   : > { %v469_v55 = vsel %vm3231_vm5, %v468_v54, 2147483647 }
 0x198   : > { %v471_v56 = vshra.s32 %v469_v55, 16  ;;  %v470_v58 = vand.u32 65535, %v469_v55 }
 0x19a   : > { %v473_v57 = vcvt.s32.f32 %v471_v56  ;;  %v472_v60 = vcvt.s32.f32 %v470_v58 }
 0x19c   : > { %474 = vmin.xlane.f32.xlu1 %v473_v57 }
 0x229   : > { %v475_v59 = vpop.xlane.xlu1 %474 }
 0x22a   : > { %vm476_vm7 = vcmp.eq.f32.partialorder %v473_v57, %v475_v59  ;;  %v481_v62 = vcvt.f32.s32 %v475_v59 }
 0x22b   : > { %v477_v61 = vsel %vm476_vm7, %v472_v60, inf }
 0x22c   : > { %478 = vmin.xlane.f32.xlu0 %v477_v61  ;;  %v482_v0 = vshll.u32 %v481_v62, 16 }
 0x2b9   : > { %v479_v63 = vpop.xlane.xlu0 %478 }
 0x2ba   : > { %v480_v3 = vcvt.f32.s32 %v479_v63 }
 0x2bc   : > { %v483_v5 = vadd.s32 %v482_v0, %v480_v3 }
 0x2be   : > { %v491_v6 = vrot.slane %v483_v5, %v2541_v1  ;;  %v495_v7 = vrot.slane %v483_v5, %v2544_v2  ;;  %vm484_vm13 = vcmp.eq.s32.totalorder %v2506_v16, %v483_v5 }
 0x2bf   : > { %vm2572_vm14 = vmor %vm456_vm4, %vm484_vm13 }
 0x2c0   : > { %vm496_vm9 = vcmp.eq.s32.totalorder %v2508_v19, %v491_v6  ;;  %vm497_vm10 = vcmp.eq.s32.totalorder %v2547_v4, %v491_v6  ;;  %vm498_vm11 = vcmp.eq.s32.totalorder %v2508_v19, %v495_v7  ;;  %vm499_vm12 = vcmp.eq.s32.totalorder %v2547_v4, %v495_v7 }
 0x2c1   : > { %v508_v10 = vsel %vm496_vm9, %v2526_v48, 1e+30  ;;  %v509_v11 = vsel %vm497_vm10, %v2551_v8, 1e+30  ;;  %v510_v12 = vsel %vm498_vm11, %v2524_v47, 1e+30 }
 0x2c2   : > { %v511_v13 = vsel %vm499_vm12, %v2553_v9, 1e+30  ;;  %v513_v14 = vsel %vm3233_vm8, %v508_v10, inf  ;;  %v514_v15 = vsel %vm3233_vm8, %v509_v11, inf  ;;  %v522_v17 = vsel %vm3233_vm8, %v510_v12, inf }
 0x2c3   : > { %v515_v18 = vmin.f32 %v513_v14, %v514_v15  ;;  %v523_v20 = vsel %vm3233_vm8, %v511_v13, inf }
 0x2c4   : > { %v524_v21 = vmin.f32 %v522_v17, %v523_v20 }
 0x2c5   : > { %v516_v24 = vrot.slane %v515_v18, 4 }
 0x2c6   : > { %v525_v25 = vrot.slane %v524_v21, 4 }
 0x2c7   : > { %v517_v26 = vmin.f32 %v515_v18, %v516_v24 }
 0x2c8   : > { %v526_v27 = vmin.f32 %v524_v21, %v525_v25 }
 0x2c9   : > { %v518_v28 = vrot.slane %v517_v26, 2 }
 0x2ca   : > { %v527_v29 = vrot.slane %v526_v27, 2 }
 0x2cb   : > { %v519_v30 = vmin.f32 %v517_v26, %v518_v28 }
 0x2cc   : > { %v528_v31 = vmin.f32 %v526_v27, %v527_v29 }
 0x2cd   : > { %v520_v32 = vrot.slane %v519_v30, 1 }
 0x2ce   : > { %v529_v33 = vrot.slane %v528_v31, 1 }
 0x2cf   : > { %v521_v34 = vmin.f32 %v519_v30, %v520_v32 }
 0x2d0   : > { %v530_v35 = vmin.f32 %v528_v31, %v529_v33 }
 0x2d1   : > { %v531_v37 = vmin.f32 %v2526_v48, %v521_v34 }
 0x2d2   : > { %v532_v36 = vmin.f32 %v2524_v47, %v530_v35 }
 0x2d4   : > { %v535_v38 = vrot.slane %v532_v36, 7 }
 0x2d6   : > { %v536_v40 = vsel %vm3232_vm3, %v535_v38, %v531_v37 }
 0x2d7   : > { %v538_v41 = vsel %vm2572_vm14, 1e+30, %v536_v40 }
 0x2d8   : > { %v539_v42 = vsel %vm3231_vm5, %v538_v41, inf }
 0x2d9   : > { %540 = vmin.xlane.f32.xlu1 %v539_v42 }
 0x366   : > { %v2580_v43 = vpop.xlane.xlu1 %540 }
 0x367   : > { %vm542_vm15 = vcmp.eq.f32.partialorder %v538_v41, %v2580_v43 }
 0x368   : > { %v543_v44 = vsel %vm542_vm15, %v2506_v16, 16 }
 0x369   : > { %v544_v45 = vsel %vm3231_vm5, %v543_v44, 2147483647 }
 0x36a   : > { %v546_v46 = vshra.s32 %v544_v45, 16  ;;  %v545_v50 = vand.u32 65535, %v544_v45 }
 0x36c   : > { %v548_v49 = vcvt.s32.f32 %v546_v46  ;;  %v547_v52 = vcvt.s32.f32 %v545_v50 }
 0x36e   : > { %549 = vmin.xlane.f32.xlu0 %v548_v49 }
 0x3fb   : > { %v550_v51 = vpop.xlane.xlu0 %549 }
 0x3fc   : > { %vm551_vm0 = vcmp.eq.f32.partialorder %v548_v49, %v550_v51  ;;  %v556_v55 = vcvt.f32.s32 %v550_v51 }
 0x3fd   : > { %v552_v54 = vsel %vm551_vm0, %v547_v52, inf }
 0x3fe   : > { %553 = vmin.xlane.f32.xlu1 %v552_v54  ;;  %v557_v57 = vshll.u32 %v556_v55, 16 }
 0x48b   : > { %v554_v56 = vpop.xlane.xlu1 %553 }
 0x48c   : > { %v555_v58 = vcvt.f32.s32 %v554_v56 }
 0x48e   : > { %v558_v59 = vadd.s32 %v557_v57, %v555_v58 }
 0x490   : > { %v567_v60 = vrot.slane %v558_v59, %v2541_v1  ;;  %v571_v61 = vrot.slane %v558_v59, %v2544_v2  ;;  %vm559_vm10 = vcmp.eq.s32.totalorder %v2506_v16, %v558_v59 }
 0x491   : > { %vm2602_vm11 = vmor %vm2572_vm14, %vm559_vm10 }
 0x492   : > { %vm572_vm1 = vcmp.eq.s32.totalorder %v2508_v19, %v567_v60  ;;  %vm573_vm6 = vcmp.eq.s32.totalorder %v2547_v4, %v567_v60  ;;  %vm574_vm7 = vcmp.eq.s32.totalorder %v2508_v19, %v571_v61  ;;  %vm575_vm9 = vcmp.eq.s32.totalorder %v2547_v4, %v571_v61 }
 0x493   : > { %v584_v62 = vsel %vm572_vm1, %v2526_v48, 1e+30  ;;  %v585_v63 = vsel %vm573_vm6, %v2551_v8, 1e+30  ;;  %v586_v0 = vsel %vm574_vm7, %v2524_v47, 1e+30 }
 0x494   : > { %v587_v3 = vsel %vm575_vm9, %v2553_v9, 1e+30  ;;  %v588_v5 = vsel %vm3233_vm8, %v584_v62, inf  ;;  %v589_v6 = vsel %vm3233_vm8, %v585_v63, inf  ;;  %v597_v7 = vsel %vm3233_vm8, %v586_v0, inf }
 0x495   : > { %v590_v10 = vmin.f32 %v588_v5, %v589_v6  ;;  %v598_v11 = vsel %vm3233_vm8, %v587_v3, inf }
 0x496   : > { %v599_v12 = vmin.f32 %v597_v7, %v598_v11 }
 0x497   : > { %v591_v13 = vrot.slane %v590_v10, 4 }
 0x498   : > { %v600_v14 = vrot.slane %v599_v12, 4 }
 0x499   : > { %v592_v15 = vmin.f32 %v590_v10, %v591_v13 }
 0x49a   : > { %v601_v17 = vmin.f32 %v599_v12, %v600_v14 }
 0x49b   : > { %v593_v18 = vrot.slane %v592_v15, 2 }
 0x49c   : > { %v602_v20 = vrot.slane %v601_v17, 2 }
 0x49d   : > { %v594_v21 = vmin.f32 %v592_v15, %v593_v18 }
 0x49e   : > { %v603_v24 = vmin.f32 %v601_v17, %v602_v20 }
 0x49f   : > { %v595_v25 = vrot.slane %v594_v21, 1 }
 0x4a0   : > { %v604_v26 = vrot.slane %v603_v24, 1 }
 0x4a1   : > { %v596_v27 = vmin.f32 %v594_v21, %v595_v25 }
 0x4a2   : > { %v605_v28 = vmin.f32 %v603_v24, %v604_v26 }
 0x4a3   : > { %v606_v30 = vmin.f32 %v531_v37, %v596_v27 }
 0x4a4   : > { %v607_v29 = vmin.f32 %v532_v36, %v605_v28 }
 0x4a6   : > { %v610_v31 = vrot.slane %v607_v29, 7 }
 0x4a8   : > { %v611_v33 = vsel %vm3232_vm3, %v610_v31, %v606_v30 }
 0x4a9   : > { %v613_v34 = vsel %vm2602_vm11, 1e+30, %v611_v33 }
 0x4aa   : > { %v614_v35 = vsel %vm3231_vm5, %v613_v34, inf }
 0x4ab   : > { %615 = vmin.xlane.f32.xlu0 %v614_v35 }
 0x538   : > { %v2610_v38 = vpop.xlane.xlu0 %615 }
 0x539   : > { %vm617_vm12 = vcmp.eq.f32.partialorder %v613_v34, %v2610_v38 }
 0x53a   : > { %v618_v36 = vsel %vm617_vm12, %v2506_v16, 16 }
 0x53b   : > { %v619_v37 = vsel %vm3231_vm5, %v618_v36, 2147483647 }
 0x53c   : > { %v621_v39 = vshra.s32 %v619_v37, 16  ;;  %v620_v41 = vand.u32 65535, %v619_v37 }
 0x53e   : > { %v623_v40 = vcvt.s32.f32 %v621_v39  ;;  %v622_v44 = vcvt.s32.f32 %v620_v41 }
 0x540   : > { %624 = vmin.xlane.f32.xlu1 %v623_v40 }
 0x5cd   : > { %v625_v42 = vpop.xlane.xlu1 %624 }
 0x5ce   : > { %vm626_vm13 = vcmp.eq.f32.partialorder %v623_v40, %v625_v42  ;;  %v631_v46 = vcvt.f32.s32 %v625_v42 }
 0x5cf   : > { %v627_v45 = vsel %vm626_vm13, %v622_v44, inf }
 0x5d0   : > { %628 = vmin.xlane.f32.xlu0 %v627_v45  ;;  %v632_v50 = vshll.u32 %v631_v46, 16 }
 0x65d   : > { %v629_v49 = vpop.xlane.xlu0 %628 }
 0x65e   : > { %v630_v51 = vcvt.f32.s32 %v629_v49 }
 0x660   : > { %v633_v52 = vadd.s32 %v632_v50, %v630_v51 }
 0x662   : > { %v642_v54 = vrot.slane %v633_v52, %v2541_v1  ;;  %v646_v55 = vrot.slane %v633_v52, %v2544_v2  ;;  %vm634_vm6 = vcmp.eq.s32.totalorder %v2506_v16, %v633_v52 }
 0x663   : > { %vm2632_vm7 = vmor %vm2602_vm11, %vm634_vm6 }
 0x664   : > { %vm647_vm14 = vcmp.eq.s32.totalorder %v2508_v19, %v642_v54  ;;  %vm648_vm15 = vcmp.eq.s32.totalorder %v2547_v4, %v642_v54  ;;  %vm649_vm0 = vcmp.eq.s32.totalorder %v2508_v19, %v646_v55  ;;  %vm650_vm1 = vcmp.eq.s32.totalorder %v2547_v4, %v646_v55 }
 0x665   : > { %v659_v56 = vsel %vm647_vm14, %v2526_v48, 1e+30  ;;  %v660_v57 = vsel %vm648_vm15, %v2551_v8, 1e+30  ;;  %v661_v58 = vsel %vm649_vm0, %v2524_v47, 1e+30 }
 0x666   : > { %v662_v59 = vsel %vm650_vm1, %v2553_v9, 1e+30  ;;  %v663_v60 = vsel %vm3233_vm8, %v659_v56, inf  ;;  %v664_v61 = vsel %vm3233_vm8, %v660_v57, inf  ;;  %v672_v62 = vsel %vm3233_vm8, %v661_v58, inf }
 0x667   : > { %v665_v63 = vmin.f32 %v663_v60, %v664_v61  ;;  %v673_v0 = vsel %vm3233_vm8, %v662_v59, inf }
 0x668   : > { %v674_v3 = vmin.f32 %v672_v62, %v673_v0 }
 0x669   : > { %v666_v5 = vrot.slane %v665_v63, 4 }
 0x66a   : > { %v675_v6 = vrot.slane %v674_v3, 4 }
 0x66b   : > { %v667_v7 = vmin.f32 %v665_v63, %v666_v5 }
 0x66c   : > { %v676_v10 = vmin.f32 %v674_v3, %v675_v6 }
 0x66d   : > { %v668_v11 = vrot.slane %v667_v7, 2 }
 0x66e   : > { %v677_v12 = vrot.slane %v676_v10, 2 }
 0x66f   : > { %v669_v13 = vmin.f32 %v667_v7, %v668_v11 }
 0x670   : > { %v678_v14 = vmin.f32 %v676_v10, %v677_v12 }
 0x671   : > { %v670_v15 = vrot.slane %v669_v13, 1 }
 0x672   : > { %v679_v17 = vrot.slane %v678_v14, 1 }
 0x673   : > { %v671_v18 = vmin.f32 %v669_v13, %v670_v15 }
 0x674   : > { %v680_v20 = vmin.f32 %v678_v14, %v679_v17 }
 0x675   : > { %v681_v24 = vmin.f32 %v606_v30, %v671_v18 }
 0x676   : > { %v682_v21 = vmin.f32 %v607_v29, %v680_v20 }
 0x678   : > { %v685_v25 = vrot.slane %v682_v21, 7 }
 0x67a   : > { %v686_v27 = vsel %vm3232_vm3, %v685_v25, %v681_v24 }
 0x67b   : > { %v688_v28 = vsel %vm2632_vm7, 1e+30, %v686_v27 }
 0x67c   : > { %v689_v31 = vsel %vm3231_vm5, %v688_v28, inf }
 0x67d   : > { %690 = vmin.xlane.f32.xlu1 %v689_v31 }
 0x70a   : > { %v2640_v33 = vpop.xlane.xlu1 %690 }
 0x70b   : > { %vm692_vm9 = vcmp.eq.f32.partialorder %v688_v28, %v2640_v33 }
 0x70c   : > { %v693_v29 = vsel %vm692_vm9, %v2506_v16, 16 }
 0x70d   : > { %v694_v30 = vsel %vm3231_vm5, %v693_v29, 2147483647 }
 0x70e   : > { %v696_v32 = vshra.s32 %v694_v30, 16  ;;  %v695_v35 = vand.u32 65535, %v694_v30 }
 0x710   : > { %v698_v34 = vcvt.s32.f32 %v696_v32  ;;  %v697_v37 = vcvt.s32.f32 %v695_v35 }
 0x712   : > { %699 = vmin.xlane.f32.xlu0 %v698_v34 }
 0x79f   : > { %v700_v36 = vpop.xlane.xlu0 %699 }
 0x7a0   : > { %vm701_vm10 = vcmp.eq.f32.partialorder %v698_v34, %v700_v36  ;;  %v706_v40 = vcvt.f32.s32 %v700_v36 }
 0x7a1   : > { %v702_v39 = vsel %vm701_vm10, %v697_v37, inf }
 0x7a2   : > { %703 = vmin.xlane.f32.xlu1 %v702_v39  ;;  %v707_v42 = vshll.u32 %v706_v40, 16 }
 0x82f   : > { %v704_v41 = vpop.xlane.xlu1 %703 }
 0x830   : > { %v705_v44 = vcvt.f32.s32 %v704_v41 }
 0x832   : > { %v708_v45 = vadd.s32 %v707_v42, %v705_v44 }
 0x834   : > { %v717_v46 = vrot.slane %v708_v45, %v2541_v1  ;;  %v721_v49 = vrot.slane %v708_v45, %v2544_v2  ;;  %vm709_vm15 = vcmp.eq.s32.totalorder %v2506_v16, %v708_v45 }
 0x835   : > { %vm2662_vm0 = vmor %vm2632_vm7, %vm709_vm15 }
 0x836   : > { %vm722_vm11 = vcmp.eq.s32.totalorder %v2508_v19, %v717_v46  ;;  %vm723_vm12 = vcmp.eq.s32.totalorder %v2547_v4, %v717_v46  ;;  %vm724_vm13 = vcmp.eq.s32.totalorder %v2508_v19, %v721_v49  ;;  %vm725_vm14 = vcmp.eq.s32.totalorder %v2547_v4, %v721_v49 }
 0x837   : > { %v734_v50 = vsel %vm722_vm11, %v2526_v48, 1e+30  ;;  %v735_v51 = vsel %vm723_vm12, %v2551_v8, 1e+30  ;;  %v736_v52 = vsel %vm724_vm13, %v2524_v47, 1e+30 }
 0x838   : > { %v737_v54 = vsel %vm725_vm14, %v2553_v9, 1e+30  ;;  %v738_v55 = vsel %vm3233_vm8, %v734_v50, inf  ;;  %v739_v56 = vsel %vm3233_vm8, %v735_v51, inf  ;;  %v747_v57 = vsel %vm3233_vm8, %v736_v52, inf }
 0x839   : > { %v740_v58 = vmin.f32 %v738_v55, %v739_v56  ;;  %v748_v59 = vsel %vm3233_vm8, %v737_v54, inf }
 0x83a   : > { %v749_v60 = vmin.f32 %v747_v57, %v748_v59 }
 0x83b   : > { %v741_v61 = vrot.slane %v740_v58, 4 }
 0x83c   : > { %v750_v62 = vrot.slane %v749_v60, 4 }
 0x83d   : > { %v742_v63 = vmin.f32 %v740_v58, %v741_v61 }
 0x83e   : > { %v751_v0 = vmin.f32 %v749_v60, %v750_v62 }
 0x83f   : > { %v743_v3 = vrot.slane %v742_v63, 2 }
 0x840   : > { %v752_v5 = vrot.slane %v751_v0, 2 }
 0x841   : > { %v744_v6 = vmin.f32 %v742_v63, %v743_v3 }
 0x842   : > { %v753_v7 = vmin.f32 %v751_v0, %v752_v5 }
 0x843   : > { %v745_v10 = vrot.slane %v744_v6, 1 }
 0x844   : > { %v754_v11 = vrot.slane %v753_v7, 1 }
 0x845   : > { %v746_v12 = vmin.f32 %v744_v6, %v745_v10 }
 0x846   : > { %v755_v13 = vmin.f32 %v753_v7, %v754_v11 }
 0x847   : > { %v756_v15 = vmin.f32 %v681_v24, %v746_v12 }
 0x848   : > { %v757_v14 = vmin.f32 %v682_v21, %v755_v13 }
 0x84a   : > { %v760_v17 = vrot.slane %v757_v14, 7 }
 0x84c   : > { %v761_v20 = vsel %vm3232_vm3, %v760_v17, %v756_v15 }
 0x84d   : > { %v763_v25 = vsel %vm2662_vm0, 1e+30, %v761_v20 }
 0x84e   : > { %v764_v27 = vsel %vm3231_vm5, %v763_v25, inf }
 0x84f   : > { %765 = vmin.xlane.f32.xlu0 %v764_v27 }
 0x8dc   : > { %v2670_v28 = vpop.xlane.xlu0 %765 }
 0x8dd   : > { %vm767_vm1 = vcmp.eq.f32.partialorder %v763_v25, %v2670_v28 }
 0x8de   : > { %v768_v21 = vsel %vm767_vm1, %v2506_v16, 16 }
 0x8df   : > { %v769_v24 = vsel %vm3231_vm5, %v768_v21, 2147483647 }
 0x8e0   : > { %v771_v26 = vshra.s32 %v769_v24, 16  ;;  %v770_v29 = vand.u32 65535, %v769_v24 }
 0x8e2   : > { %v773_v31 = vcvt.s32.f32 %v771_v26  ;;  %v772_v32 = vcvt.s32.f32 %v770_v29 }
 0x8e4   : > { %774 = vmin.xlane.f32.xlu1 %v773_v31 }
 0x971   : > { %v775_v30 = vpop.xlane.xlu1 %774 }
 0x972   : > { %vm776_vm6 = vcmp.eq.f32.partialorder %v773_v31, %v775_v30  ;;  %v781_v35 = vcvt.f32.s32 %v775_v30 }
 0x973   : > { %v777_v34 = vsel %vm776_vm6, %v772_v32, inf }
 0x974   : > { %778 = vmin.xlane.f32.xlu0 %v777_v34  ;;  %v782_v37 = vshll.u32 %v781_v35, 16 }
 0xa01   : > { %v779_v36 = vpop.xlane.xlu0 %778 }
 0xa02   : > { %v780_v39 = vcvt.f32.s32 %v779_v36 }
 0xa04   : > { %v783_v40 = vadd.s32 %v782_v37, %v780_v39 }
 0xa06   : > { %v792_v41 = vrot.slane %v783_v40, %v2541_v1  ;;  %v796_v42 = vrot.slane %v783_v40, %v2544_v2  ;;  %vm784_vm12 = vcmp.eq.s32.totalorder %v2506_v16, %v783_v40 }
 0xa07   : > { %vm2692_vm13 = vmor %vm2662_vm0, %vm784_vm12 }
 0xa08   : > { %vm797_vm7 = vcmp.eq.s32.totalorder %v2508_v19, %v792_v41  ;;  %vm798_vm9 = vcmp.eq.s32.totalorder %v2547_v4, %v792_v41  ;;  %vm799_vm10 = vcmp.eq.s32.totalorder %v2508_v19, %v796_v42  ;;  %vm800_vm11 = vcmp.eq.s32.totalorder %v2547_v4, %v796_v42 }
 0xa09   : > { %v809_v44 = vsel %vm797_vm7, %v2526_v48, 1e+30  ;;  %v810_v45 = vsel %vm798_vm9, %v2551_v8, 1e+30  ;;  %v811_v46 = vsel %vm799_vm10, %v2524_v47, 1e+30 }
 0xa0a   : > { %v812_v49 = vsel %vm800_vm11, %v2553_v9, 1e+30  ;;  %v813_v50 = vsel %vm3233_vm8, %v809_v44, inf  ;;  %v814_v51 = vsel %vm3233_vm8, %v810_v45, inf  ;;  %v822_v52 = vsel %vm3233_vm8, %v811_v46, inf }
 0xa0b   : > { %v815_v54 = vmin.f32 %v813_v50, %v814_v51  ;;  %v823_v55 = vsel %vm3233_vm8, %v812_v49, inf }
 0xa0c   : > { %v824_v56 = vmin.f32 %v822_v52, %v823_v55 }
 0xa0d   : > { %v816_v57 = vrot.slane %v815_v54, 4 }
 0xa0e   : > { %v825_v58 = vrot.slane %v824_v56, 4 }
 0xa0f   : > { %v817_v59 = vmin.f32 %v815_v54, %v816_v57 }
 0xa10   : > { %v826_v60 = vmin.f32 %v824_v56, %v825_v58 }
 0xa11   : > { %v818_v61 = vrot.slane %v817_v59, 2 }
 0xa12   : > { %v827_v62 = vrot.slane %v826_v60, 2 }
 0xa13   : > { %v819_v63 = vmin.f32 %v817_v59, %v818_v61 }
 0xa14   : > { %v828_v0 = vmin.f32 %v826_v60, %v827_v62 }
 0xa15   : > { %v820_v3 = vrot.slane %v819_v63, 1 }
 0xa16   : > { %v829_v5 = vrot.slane %v828_v0, 1 }
 0xa17   : > { %v821_v6 = vmin.f32 %v819_v63, %v820_v3 }
 0xa18   : > { %v830_v7 = vmin.f32 %v828_v0, %v829_v5 }
 0xa19   : > { %v831_v11 = vmin.f32 %v756_v15, %v821_v6 }
 0xa1a   : > { %v832_v10 = vmin.f32 %v757_v14, %v830_v7 }
 0xa1c   : > { %v835_v12 = vrot.slane %v832_v10, 7 }
 0xa1e   : > { %v836_v17 = vsel %vm3232_vm3, %v835_v12, %v831_v11 }
 0xa1f   : > { %v838_v20 = vsel %vm2692_vm13, 1e+30, %v836_v17 }
 0xa20   : > { %v839_v25 = vsel %vm3231_vm5, %v838_v20, inf }
 0xa21   : > { %840 = vmin.xlane.f32.xlu1 %v839_v25 }
 0xaae   : > { %v2700_v27 = vpop.xlane.xlu1 %840 }
 0xaaf   : > { %vm842_vm14 = vcmp.eq.f32.partialorder %v838_v20, %v2700_v27 }
 0xab0   : > { %v843_v14 = vsel %vm842_vm14, %v2506_v16, 16 }
 0xab1   : > { %v844_v15 = vsel %vm3231_vm5, %v843_v14, 2147483647 }
 0xab2   : > { %v846_v18 = vshra.s32 %v844_v15, 16  ;;  %v845_v24 = vand.u32 65535, %v844_v15 }
 0xab4   : > { %v848_v21 = vcvt.s32.f32 %v846_v18  ;;  %v847_v31 = vcvt.s32.f32 %v845_v24 }
 0xab6   : > { %849 = vmin.xlane.f32.xlu0 %v848_v21 }
 0xb43   : > { %v850_v26 = vpop.xlane.xlu0 %849 }
 0xb44   : > { %vm851_vm15 = vcmp.eq.f32.partialorder %v848_v21, %v850_v26  ;;  %v856_v30 = vcvt.f32.s32 %v850_v26 }
 0xb45   : > { %v852_v29 = vsel %vm851_vm15, %v847_v31, inf }
 0xb46   : > { %853 = vmin.xlane.f32.xlu1 %v852_v29  ;;  %v857_v34 = vshll.u32 %v856_v30, 16 }
 0xbd3   : > { %v854_v32 = vpop.xlane.xlu1 %853 }
 0xbd4   : > { %v855_v35 = vcvt.f32.s32 %v854_v32 }
 0xbd6   : > { %v858_v36 = vadd.s32 %v857_v34, %v855_v35 }
 0xbd8   : > { %v867_v37 = vrot.slane %v858_v36, %v2541_v1  ;;  %v871_v39 = vrot.slane %v858_v36, %v2544_v2  ;;  %vm859_vm9 = vcmp.eq.s32.totalorder %v2506_v16, %v858_v36 }
 0xbd9   : > { %vm2722_vm10 = vmor %vm2692_vm13, %vm859_vm9 }
 0xbda   : > { %vm872_vm0 = vcmp.eq.s32.totalorder %v2508_v19, %v867_v37  ;;  %vm873_vm1 = vcmp.eq.s32.totalorder %v2547_v4, %v867_v37  ;;  %vm874_vm6 = vcmp.eq.s32.totalorder %v2508_v19, %v871_v39  ;;  %vm875_vm7 = vcmp.eq.s32.totalorder %v2547_v4, %v871_v39 }
 0xbdb   : > { %v884_v40 = vsel %vm872_vm0, %v2526_v48, 1e+30  ;;  %v885_v41 = vsel %vm873_vm1, %v2551_v8, 1e+30  ;;  %v886_v42 = vsel %vm874_vm6, %v2524_v47, 1e+30 }
 0xbdc   : > { %v887_v44 = vsel %vm875_vm7, %v2553_v9, 1e+30  ;;  %v888_v45 = vsel %vm3233_vm8, %v884_v40, inf  ;;  %v889_v46 = vsel %vm3233_vm8, %v885_v41, inf  ;;  %v897_v49 = vsel %vm3233_vm8, %v886_v42, inf }
 0xbdd   : > { %v890_v50 = vmin.f32 %v888_v45, %v889_v46  ;;  %v898_v51 = vsel %vm3233_vm8, %v887_v44, inf }
 0xbde   : > { %v899_v52 = vmin.f32 %v897_v49, %v898_v51 }
 0xbdf   : > { %v891_v54 = vrot.slane %v890_v50, 4 }
 0xbe0   : > { %v900_v55 = vrot.slane %v899_v52, 4 }
 0xbe1   : > { %v892_v56 = vmin.f32 %v890_v50, %v891_v54 }
 0xbe2   : > { %v901_v57 = vmin.f32 %v899_v52, %v900_v55 }
 0xbe3   : > { %v893_v58 = vrot.slane %v892_v56, 2 }
 0xbe4   : > { %v902_v59 = vrot.slane %v901_v57, 2 }
 0xbe5   : > { %v894_v60 = vmin.f32 %v892_v56, %v893_v58 }
 0xbe6   : > { %v903_v61 = vmin.f32 %v901_v57, %v902_v59 }
 0xbe7   : > { %v895_v62 = vrot.slane %v894_v60, 1 }
 0xbe8   : > { %v904_v63 = vrot.slane %v903_v61, 1 }
 0xbe9   : > { %v896_v0 = vmin.f32 %v894_v60, %v895_v62 }
 0xbea   : > { %v905_v3 = vmin.f32 %v903_v61, %v904_v63 }
 0xbeb   : > { %v906_v6 = vmin.f32 %v831_v11, %v896_v0 }
 0xbec   : > { %v907_v5 = vmin.f32 %v832_v10, %v905_v3 }
 0xbee   : > { %v910_v7 = vrot.slane %v907_v5, 7 }
 0xbf0   : > { %v911_v17 = vsel %vm3232_vm3, %v910_v7, %v906_v6 }
 0xbf1   : > { %v913_v20 = vsel %vm2722_vm10, 1e+30, %v911_v17 }
 0xbf2   : > { %v914_v25 = vsel %vm3231_vm5, %v913_v20, inf }
 0xbf3   : > { %915 = vmin.xlane.f32.xlu0 %v914_v25 }
 0xc80   : > { %v2730_v14 = vpop.xlane.xlu0 %915 }
 0xc81   : > { %vm917_vm11 = vcmp.eq.f32.partialorder %v913_v20, %v2730_v14 }
 0xc82   : > { %v918_v10 = vsel %vm917_vm11, %v2506_v16, 16 }
 0xc83   : > { %v919_v11 = vsel %vm3231_vm5, %v918_v10, 2147483647 }
 0xc84   : > { %v921_v13 = vshra.s32 %v919_v11, 16  ;;  %v920_v18 = vand.u32 65535, %v919_v11 }
 0xc86   : > { %v923_v15 = vcvt.s32.f32 %v921_v13  ;;  %v922_v24 = vcvt.s32.f32 %v920_v18 }
 0xc88   : > { %924 = vmin.xlane.f32.xlu1 %v923_v15 }
 0xd15   : > { %v925_v21 = vpop.xlane.xlu1 %924 }
 0xd16   : > { %vm926_vm12 = vcmp.eq.f32.partialorder %v923_v15, %v925_v21  ;;  %v931_v31 = vcvt.f32.s32 %v925_v21 }
 0xd17   : > { %v927_v26 = vsel %vm926_vm12, %v922_v24, inf }
 0xd18   : > { %928 = vmin.xlane.f32.xlu0 %v927_v26  ;;  %v932_v30 = vshll.u32 %v931_v31, 16 }
 0xda5   : > { %v929_v29 = vpop.xlane.xlu0 %928 }
 0xda6   : > { %v930_v32 = vcvt.f32.s32 %v929_v29 }
 0xda8   : > { %v933_v34 = vadd.s32 %v932_v30, %v930_v32 }
 0xdaa   : > { %v942_v35 = vrot.slane %v933_v34, %v2541_v1  ;;  %v946_v36 = vrot.slane %v933_v34, %v2544_v2  ;;  %vm934_vm1 = vcmp.eq.s32.totalorder %v2506_v16, %v933_v34 }
 0xdab   : > { %vm2752_vm6 = vmor %vm2722_vm10, %vm934_vm1 }
 0xdac   : > { %vm947_vm13 = vcmp.eq.s32.totalorder %v2508_v19, %v942_v35  ;;  %vm948_vm14 = vcmp.eq.s32.totalorder %v2547_v4, %v942_v35  ;;  %vm949_vm15 = vcmp.eq.s32.totalorder %v2508_v19, %v946_v36  ;;  %vm950_vm0 = vcmp.eq.s32.totalorder %v2547_v4, %v946_v36 }
 0xdad   : > { %v959_v37 = vsel %vm947_vm13, %v2526_v48, 1e+30  ;;  %v960_v39 = vsel %vm948_vm14, %v2551_v8, 1e+30  ;;  %v961_v40 = vsel %vm949_vm15, %v2524_v47, 1e+30 }
 0xdae   : > { %v962_v41 = vsel %vm950_vm0, %v2553_v9, 1e+30  ;;  %v963_v42 = vsel %vm3233_vm8, %v959_v37, inf  ;;  %v964_v44 = vsel %vm3233_vm8, %v960_v39, inf  ;;  %v972_v45 = vsel %vm3233_vm8, %v961_v40, inf }
 0xdaf   : > { %v965_v46 = vmin.f32 %v963_v42, %v964_v44  ;;  %v973_v49 = vsel %vm3233_vm8, %v962_v41, inf }
 0xdb0   : > { %v974_v50 = vmin.f32 %v972_v45, %v973_v49 }
 0xdb1   : > { %v966_v51 = vrot.slane %v965_v46, 4 }
 0xdb2   : > { %v975_v52 = vrot.slane %v974_v50, 4 }
 0xdb3   : > { %v967_v54 = vmin.f32 %v965_v46, %v966_v51 }
 0xdb4   : > { %v976_v55 = vmin.f32 %v974_v50, %v975_v52 }
 0xdb5   : > { %v968_v56 = vrot.slane %v967_v54, 2 }
 0xdb6   : > { %v977_v57 = vrot.slane %v976_v55, 2 }
 0xdb7   : > { %v969_v58 = vmin.f32 %v967_v54, %v968_v56 }
 0xdb8   : > { %v978_v59 = vmin.f32 %v976_v55, %v977_v57 }
 0xdb9   : > { %v970_v60 = vrot.slane %v969_v58, 1 }
 0xdba   : > { %v979_v61 = vrot.slane %v978_v59, 1 }
 0xdbb   : > { %v971_v62 = vmin.f32 %v969_v58, %v970_v60 }
 0xdbc   : > { %v980_v63 = vmin.f32 %v978_v59, %v979_v61 }
 0xdbd   : > { %v981_v3 = vmin.f32 %v906_v6, %v971_v62 }
 0xdbe   : > { %v982_v0 = vmin.f32 %v907_v5, %v980_v63 }
 0xdc0   : > { %v985_v7 = vrot.slane %v982_v0, 7 }
 0xdc2   : > { %v986_v20 = vsel %vm3232_vm3, %v985_v7, %v981_v3 }
 0xdc3   : > { %v988_v25 = vsel %vm2752_vm6, 1e+30, %v986_v20 }
 0xdc4   : > { %v989_v10 = vsel %vm3231_vm5, %v988_v25, inf }
 0xdc5   : > { %990 = vmin.xlane.f32.xlu1 %v989_v10 }
 0xe52   : > { %v2760_v11 = vpop.xlane.xlu1 %990 }
 0xe53   : > { %vm992_vm7 = vcmp.eq.f32.partialorder %v988_v25, %v2760_v11 }
 0xe54   : > { %v993_v5 = vsel %vm992_vm7, %v2506_v16, 16 }
 0xe55   : > { %v994_v6 = vsel %vm3231_vm5, %v993_v5, 2147483647 }
 0xe56   : > { %v996_v12 = vshra.s32 %v994_v6, 16  ;;  %v995_v15 = vand.u32 65535, %v994_v6 }
 0xe58   : > { %v998_v13 = vcvt.s32.f32 %v996_v12  ;;  %v997_v21 = vcvt.s32.f32 %v995_v15 }
 0xe5a   : > { %999 = vmin.xlane.f32.xlu0 %v998_v13 }
 0xee7   : > { %v1000_v18 = vpop.xlane.xlu0 %999 }
 0xee8   : > { %vm1001_vm9 = vcmp.eq.f32.partialorder %v998_v13, %v1000_v18  ;;  %v1006_v26 = vcvt.f32.s32 %v1000_v18 }
 0xee9   : > { %v1002_v24 = vsel %vm1001_vm9, %v997_v21, inf }
 0xeea   : > { %1003 = vmin.xlane.f32.xlu1 %v1002_v24  ;;  %v1007_v29 = vshll.u32 %v1006_v26, 16 }
 0xf77   : > { %v1004_v31 = vpop.xlane.xlu1 %1003 }
 0xf78   : > { %v1005_v30 = vcvt.f32.s32 %v1004_v31 }
 0xf7a   : > { %v1008_v32 = vadd.s32 %v1007_v29, %v1005_v30 }
 0xf7c   : > { %v1017_v34 = vrot.slane %v1008_v32, %v2541_v1  ;;  %v1021_v35 = vrot.slane %v1008_v32, %v2544_v2  ;;  %vm1009_vm14 = vcmp.eq.s32.totalorder %v2506_v16, %v1008_v32 }
 0xf7d   : > { %vm2782_vm15 = vmor %vm2752_vm6, %vm1009_vm14 }
 0xf7e   : > { %vm1022_vm10 = vcmp.eq.s32.totalorder %v2508_v19, %v1017_v34  ;;  %vm1023_vm11 = vcmp.eq.s32.totalorder %v2547_v4, %v1017_v34  ;;  %vm1024_vm12 = vcmp.eq.s32.totalorder %v2508_v19, %v1021_v35  ;;  %vm1025_vm13 = vcmp.eq.s32.totalorder %v2547_v4, %v1021_v35 }
 0xf7f   : > { %v1034_v36 = vsel %vm1022_vm10, %v2526_v48, 1e+30  ;;  %v1035_v37 = vsel %vm1023_vm11, %v2551_v8, 1e+30  ;;  %v1036_v39 = vsel %vm1024_vm12, %v2524_v47, 1e+30 }
 0xf80   : > { %v1037_v40 = vsel %vm1025_vm13, %v2553_v9, 1e+30  ;;  %v1038_v41 = vsel %vm3233_vm8, %v1034_v36, inf  ;;  %v1039_v42 = vsel %vm3233_vm8, %v1035_v37, inf  ;;  %v1047_v44 = vsel %vm3233_vm8, %v1036_v39, inf }
 0xf81   : > { %v1040_v45 = vmin.f32 %v1038_v41, %v1039_v42  ;;  %v1048_v46 = vsel %vm3233_vm8, %v1037_v40, inf }
 0xf82   : > { %v1049_v49 = vmin.f32 %v1047_v44, %v1048_v46 }
 0xf83   : > { %v1041_v50 = vrot.slane %v1040_v45, 4 }
 0xf84   : > { %v1050_v51 = vrot.slane %v1049_v49, 4 }
 0xf85   : > { %v1042_v52 = vmin.f32 %v1040_v45, %v1041_v50 }
 0xf86   : > { %v1051_v54 = vmin.f32 %v1049_v49, %v1050_v51 }
 0xf87   : > { %v1043_v55 = vrot.slane %v1042_v52, 2 }
 0xf88   : > { %v1052_v56 = vrot.slane %v1051_v54, 2 }
 0xf89   : > { %v1044_v57 = vmin.f32 %v1042_v52, %v1043_v55 }
 0xf8a   : > { %v1053_v58 = vmin.f32 %v1051_v54, %v1052_v56 }
 0xf8b   : > { %v1045_v59 = vrot.slane %v1044_v57, 1 }
 0xf8c   : > { %v1054_v60 = vrot.slane %v1053_v58, 1 }
 0xf8d   : > { %v1046_v61 = vmin.f32 %v1044_v57, %v1045_v59 }
 0xf8e   : > { %v1055_v62 = vmin.f32 %v1053_v58, %v1054_v60 }
 0xf8f   : > { %v1056_v7 = vmin.f32 %v981_v3, %v1046_v61 }
 0xf90   : > { %v1057_v63 = vmin.f32 %v982_v0, %v1055_v62 }
 0xf92   : > { %v1060_v20 = vrot.slane %v1057_v63, 7 }
 0xf94   : > { %v1061_v10 = vsel %vm3232_vm3, %v1060_v20, %v1056_v7 }
 0xf95   : > { %v1063_v5 = vsel %vm2782_vm15, 1e+30, %v1061_v10 }
 0xf96   : > { %v1064_v6 = vsel %vm3231_vm5, %v1063_v5, inf }
 0xf97   : > { %1065 = vmin.xlane.f32.xlu0 %v1064_v6 }
0x1024   : > { %v2790_v12 = vpop.xlane.xlu0 %1065 }
0x1025   : > { %vm1067_vm0 = vcmp.eq.f32.partialorder %v1063_v5, %v2790_v12 }
0x1026   : > { %v1068_v0 = vsel %vm1067_vm0, %v2506_v16, 16 }
0x1027   : > { %v1069_v3 = vsel %vm3231_vm5, %v1068_v0, 2147483647 }
0x1028   : > { %v1071_v17 = vshra.s32 %v1069_v3, 16  ;;  %v1070_v15 = vand.u32 65535, %v1069_v3 }
0x102a   : > { %v1073_v13 = vcvt.s32.f32 %v1071_v17  ;;  %v1072_v21 = vcvt.s32.f32 %v1070_v15 }
0x102c   : > { %1074 = vmin.xlane.f32.xlu1 %v1073_v13 }
0x10b9   : > { %v1075_v18 = vpop.xlane.xlu1 %1074 }
0x10ba   : > { %vm1076_vm1 = vcmp.eq.f32.partialorder %v1073_v13, %v1075_v18  ;;  %v1081_v26 = vcvt.f32.s32 %v1075_v18 }
0x10bb   : > { %v1077_v24 = vsel %vm1076_vm1, %v1072_v21, inf }
0x10bc   : > { %1078 = vmin.xlane.f32.xlu0 %v1077_v24  ;;  %v1082_v29 = vshll.u32 %v1081_v26, 16 }
0x1149   : > { %v1079_v31 = vpop.xlane.xlu0 %1078 }
0x114a   : > { %v1080_v30 = vcvt.f32.s32 %v1079_v31 }
0x114c   : > { %v1083_v32 = vadd.s32 %v1082_v29, %v1080_v30 }
0x114e   : > { %v1092_v34 = vrot.slane %v1083_v32, %v2541_v1  ;;  %v1096_v35 = vrot.slane %v1083_v32, %v2544_v2  ;;  %vm1084_vm11 = vcmp.eq.s32.totalorder %v2506_v16, %v1083_v32 }
0x114f   : > { %vm2812_vm12 = vmor %vm2782_vm15, %vm1084_vm11 }
0x1150   : > { %vm1097_vm6 = vcmp.eq.s32.totalorder %v2508_v19, %v1092_v34  ;;  %vm1098_vm7 = vcmp.eq.s32.totalorder %v2547_v4, %v1092_v34  ;;  %vm1099_vm9 = vcmp.eq.s32.totalorder %v2508_v19, %v1096_v35  ;;  %vm1100_vm10 = vcmp.eq.s32.totalorder %v2547_v4, %v1096_v35 }
0x1151   : > { %v1109_v36 = vsel %vm1097_vm6, %v2526_v48, 1e+30  ;;  %v1110_v37 = vsel %vm1098_vm7, %v2551_v8, 1e+30  ;;  %v1111_v39 = vsel %vm1099_vm9, %v2524_v47, 1e+30 }
0x1152   : > { %v1112_v40 = vsel %vm1100_vm10, %v2553_v9, 1e+30  ;;  %v1113_v41 = vsel %vm3233_vm8, %v1109_v36, inf  ;;  %v1114_v42 = vsel %vm3233_vm8, %v1110_v37, inf  ;;  %v1122_v44 = vsel %vm3233_vm8, %v1111_v39, inf }
0x1153   : > { %v1115_v45 = vmin.f32 %v1113_v41, %v1114_v42  ;;  %v1123_v46 = vsel %vm3233_vm8, %v1112_v40, inf }
0x1154   : > { %v1124_v49 = vmin.f32 %v1122_v44, %v1123_v46 }
0x1155   : > { %v1116_v50 = vrot.slane %v1115_v45, 4 }
0x1156   : > { %v1125_v51 = vrot.slane %v1124_v49, 4 }
0x1157   : > { %v1117_v52 = vmin.f32 %v1115_v45, %v1116_v50 }
0x1158   : > { %v1126_v54 = vmin.f32 %v1124_v49, %v1125_v51 }
0x1159   : > { %v1118_v55 = vrot.slane %v1117_v52, 2 }
0x115a   : > { %v1127_v56 = vrot.slane %v1126_v54, 2 }
0x115b   : > { %v1119_v57 = vmin.f32 %v1117_v52, %v1118_v55 }
0x115c   : > { %v1128_v58 = vmin.f32 %v1126_v54, %v1127_v56 }
0x115d   : > { %v1120_v59 = vrot.slane %v1119_v57, 1 }
0x115e   : > { %v1129_v60 = vrot.slane %v1128_v58, 1 }
0x115f   : > { %v1121_v61 = vmin.f32 %v1119_v57, %v1120_v59 }
0x1160   : > { %v1130_v62 = vmin.f32 %v1128_v58, %v1129_v60 }
0x1161   : > { %v1131_v10 = vmin.f32 %v1056_v7, %v1121_v61 }
0x1162   : > { %v1132_v20 = vmin.f32 %v1057_v63, %v1130_v62 }
0x1164   : > { %v1135_v5 = vrot.slane %v1132_v20, 7 }
0x1166   : > { %v1136_v0 = vsel %vm3232_vm3, %v1135_v5, %v1131_v10 }
0x1167   : > { %v1138_v3 = vsel %vm2812_vm12, 1e+30, %v1136_v0 }
0x1168   : > { %v1139_v17 = vsel %vm3231_vm5, %v1138_v3, inf }
0x1169   : > { %1140 = vmin.xlane.f32.xlu1 %v1139_v17 }
0x11f6   : > { %v2820_v13 = vpop.xlane.xlu1 %1140 }
0x11f7   : > { %vm1142_vm13 = vcmp.eq.f32.partialorder %v1138_v3, %v2820_v13 }
0x11f8   : > { %v1143_v63 = vsel %vm1142_vm13, %v2506_v16, 16 }
0x11f9   : > { %v1144_v7 = vsel %vm3231_vm5, %v1143_v63, 2147483647 }
0x11fa   : > { %v1146_v25 = vshra.s32 %v1144_v7, 16  ;;  %v1145_v18 = vand.u32 65535, %v1144_v7 }
0x11fc   : > { %v1148_v15 = vcvt.s32.f32 %v1146_v25  ;;  %v1147_v24 = vcvt.s32.f32 %v1145_v18 }
0x11fe   : > { %1149 = vmin.xlane.f32.xlu0 %v1148_v15 }
0x128b   : > { %v1150_v21 = vpop.xlane.xlu0 %1149 }
0x128c   : > { %vm1151_vm14 = vcmp.eq.f32.partialorder %v1148_v15, %v1150_v21  ;;  %v1156_v31 = vcvt.f32.s32 %v1150_v21 }
0x128d   : > { %v1152_v26 = vsel %vm1151_vm14, %v1147_v24, inf }
0x128e   : > { %1153 = vmin.xlane.f32.xlu1 %v1152_v26  ;;  %v1157_v30 = vshll.u32 %v1156_v31, 16 }
0x131b   : > { %v1154_v29 = vpop.xlane.xlu1 %1153 }
0x131c   : > { %v1155_v32 = vcvt.f32.s32 %v1154_v29 }
0x131e   : > { %v1158_v34 = vadd.s32 %v1157_v30, %v1155_v32 }
0x1320   : > { %v1167_v35 = vrot.slane %v1158_v34, %v2541_v1  ;;  %v1171_v36 = vrot.slane %v1158_v34, %v2544_v2  ;;  %vm1159_vm7 = vcmp.eq.s32.totalorder %v2506_v16, %v1158_v34 }
0x1321   : > { %vm2842_vm9 = vmor %vm2812_vm12, %vm1159_vm7 }
0x1322   : > { %vm1172_vm15 = vcmp.eq.s32.totalorder %v2508_v19, %v1167_v35  ;;  %vm1173_vm0 = vcmp.eq.s32.totalorder %v2547_v4, %v1167_v35  ;;  %vm1174_vm1 = vcmp.eq.s32.totalorder %v2508_v19, %v1171_v36  ;;  %vm1175_vm6 = vcmp.eq.s32.totalorder %v2547_v4, %v1171_v36 }
0x1323   : > { %v1184_v37 = vsel %vm1172_vm15, %v2526_v48, 1e+30  ;;  %v1185_v39 = vsel %vm1173_vm0, %v2551_v8, 1e+30  ;;  %v1186_v40 = vsel %vm1174_vm1, %v2524_v47, 1e+30 }
0x1324   : > { %v1187_v41 = vsel %vm1175_vm6, %v2553_v9, 1e+30  ;;  %v1188_v42 = vsel %vm3233_vm8, %v1184_v37, inf  ;;  %v1189_v44 = vsel %vm3233_vm8, %v1185_v39, inf  ;;  %v1197_v45 = vsel %vm3233_vm8, %v1186_v40, inf }
0x1325   : > { %v1190_v46 = vmin.f32 %v1188_v42, %v1189_v44  ;;  %v1198_v49 = vsel %vm3233_vm8, %v1187_v41, inf }
0x1326   : > { %v1199_v50 = vmin.f32 %v1197_v45, %v1198_v49 }
0x1327   : > { %v1191_v51 = vrot.slane %v1190_v46, 4 }
0x1328   : > { %v1200_v52 = vrot.slane %v1199_v50, 4 }
0x1329   : > { %v1192_v54 = vmin.f32 %v1190_v46, %v1191_v51 }
0x132a   : > { %v1201_v55 = vmin.f32 %v1199_v50, %v1200_v52 }
0x132b   : > { %v1193_v56 = vrot.slane %v1192_v54, 2 }
0x132c   : > { %v1202_v57 = vrot.slane %v1201_v55, 2 }
0x132d   : > { %v1194_v58 = vmin.f32 %v1192_v54, %v1193_v56 }
0x132e   : > { %v1203_v59 = vmin.f32 %v1201_v55, %v1202_v57 }
0x132f   : > { %v1195_v60 = vrot.slane %v1194_v58, 1 }
0x1330   : > { %v1204_v61 = vrot.slane %v1203_v59, 1 }
0x1331   : > { %v1196_v62 = vmin.f32 %v1194_v58, %v1195_v60 }
0x1332   : > { %v1205_v5 = vmin.f32 %v1203_v59, %v1204_v61 }
0x1333   : > { %v1206_v3 = vmin.f32 %v1131_v10, %v1196_v62 }
0x1334   : > { %v1207_v0 = vmin.f32 %v1132_v20, %v1205_v5 }
0x1336   : > { %v1210_v17 = vrot.slane %v1207_v0, 7 }
0x1338   : > { %v1211_v7 = vsel %vm3232_vm3, %v1210_v17, %v1206_v3 }
0x1339   : > { %v1213_v25 = vsel %vm2842_vm9, 1e+30, %v1211_v7 }
0x133a   : > { %v1214_v15 = vsel %vm3231_vm5, %v1213_v25, inf }
0x133b   : > { %1215 = vmin.xlane.f32.xlu0 %v1214_v15 }
0x13c8   : > { %v2850_v18 = vpop.xlane.xlu0 %1215 }
0x13c9   : > { %vm1217_vm10 = vcmp.eq.f32.partialorder %v1213_v25, %v2850_v18 }
0x13ca   : > { %v1218_v20 = vsel %vm1217_vm10, %v2506_v16, 16 }
0x13cb   : > { %v1219_v10 = vsel %vm3231_vm5, %v1218_v20, 2147483647 }
0x13cc   : > { %v1221_v6 = vshra.s32 %v1219_v10, 16  ;;  %v1220_v24 = vand.u32 65535, %v1219_v10 }
0x13ce   : > { %v1223_v21 = vcvt.s32.f32 %v1221_v6  ;;  %v1222_v31 = vcvt.s32.f32 %v1220_v24 }
0x13d0   : > { %1224 = vmin.xlane.f32.xlu1 %v1223_v21 }
0x145d   : > { %v1225_v26 = vpop.xlane.xlu1 %1224 }
0x145e   : > { %vm1226_vm11 = vcmp.eq.f32.partialorder %v1223_v21, %v1225_v26  ;;  %v1231_v30 = vcvt.f32.s32 %v1225_v26 }
0x145f   : > { %v1227_v29 = vsel %vm1226_vm11, %v1222_v31, inf }
0x1460   : > { %1228 = vmin.xlane.f32.xlu0 %v1227_v29  ;;  %v1232_v34 = vshll.u32 %v1231_v30, 16 }
0x14ed   : > { %v1229_v32 = vpop.xlane.xlu0 %1228 }
0x14ee   : > { %v1230_v35 = vcvt.f32.s32 %v1229_v32 }
0x14f0   : > { %v1233_v36 = vadd.s32 %v1232_v34, %v1230_v35 }
0x14f2   : > { %v1242_v37 = vrot.slane %v1233_v36, %v2541_v1  ;;  %v1246_v39 = vrot.slane %v1233_v36, %v2544_v2  ;;  %vm1234_vm0 = vcmp.eq.s32.totalorder %v2506_v16, %v1233_v36 }
0x14f3   : > { %vm2872_vm1 = vmor %vm2842_vm9, %vm1234_vm0 }
0x14f4   : > { %vm1247_vm12 = vcmp.eq.s32.totalorder %v2508_v19, %v1242_v37  ;;  %vm1248_vm13 = vcmp.eq.s32.totalorder %v2547_v4, %v1242_v37  ;;  %vm1249_vm14 = vcmp.eq.s32.totalorder %v2508_v19, %v1246_v39  ;;  %vm1250_vm15 = vcmp.eq.s32.totalorder %v2547_v4, %v1246_v39 }
0x14f5   : > { %v1259_v40 = vsel %vm1247_vm12, %v2526_v48, 1e+30  ;;  %v1260_v41 = vsel %vm1248_vm13, %v2551_v8, 1e+30  ;;  %v1261_v42 = vsel %vm1249_vm14, %v2524_v47, 1e+30 }
0x14f6   : > { %v1262_v44 = vsel %vm1250_vm15, %v2553_v9, 1e+30  ;;  %v1263_v45 = vsel %vm3233_vm8, %v1259_v40, inf  ;;  %v1264_v46 = vsel %vm3233_vm8, %v1260_v41, inf  ;;  %v1272_v49 = vsel %vm3233_vm8, %v1261_v42, inf }
0x14f7   : > { %v1265_v50 = vmin.f32 %v1263_v45, %v1264_v46  ;;  %v1273_v51 = vsel %vm3233_vm8, %v1262_v44, inf }
0x14f8   : > { %v1274_v52 = vmin.f32 %v1272_v49, %v1273_v51 }
0x14f9   : > { %v1266_v54 = vrot.slane %v1265_v50, 4 }
0x14fa   : > { %v1275_v55 = vrot.slane %v1274_v52, 4 }
0x14fb   : > { %v1267_v56 = vmin.f32 %v1265_v50, %v1266_v54 }
0x14fc   : > { %v1276_v57 = vmin.f32 %v1274_v52, %v1275_v55 }
0x14fd   : > { %v1268_v58 = vrot.slane %v1267_v56, 2 }
0x14fe   : > { %v1277_v59 = vrot.slane %v1276_v57, 2 }
0x14ff   : > { %v1269_v60 = vmin.f32 %v1267_v56, %v1268_v58 }
0x1500   : > { %v1278_v61 = vmin.f32 %v1276_v57, %v1277_v59 }
0x1501   : > { %v1270_v62 = vrot.slane %v1269_v60, 1 }
0x1502   : > { %v1279_v5 = vrot.slane %v1278_v61, 1 }
0x1503   : > { %v1271_v17 = vmin.f32 %v1269_v60, %v1270_v62 }
0x1504   : > { %v1280_v7 = vmin.f32 %v1278_v61, %v1279_v5 }
0x1505   : > { %v1281_v15 = vmin.f32 %v1206_v3, %v1271_v17 }
0x1506   : > { %v1282_v25 = vmin.f32 %v1207_v0, %v1280_v7 }
0x1508   : > { %v1285_v20 = vrot.slane %v1282_v25, 7 }
0x150a   : > { %v1286_v6 = vsel %vm3232_vm3, %v1285_v20, %v1281_v15 }
0x150b   : > { %v1288_v21 = vsel %vm2872_vm1, 1e+30, %v1286_v6 }
0x150c   : > { %v1289_v24 = vsel %vm3231_vm5, %v1288_v21, inf }
0x150d   : > { %1290 = vmin.xlane.f32.xlu1 %v1289_v24 }
0x159a   : > { %v2880_v26 = vpop.xlane.xlu1 %1290 }
0x159b   : > { %vm1292_vm6 = vcmp.eq.f32.partialorder %v1288_v21, %v2880_v26 }
0x159c   : > { %v1293_v0 = vsel %vm1292_vm6, %v2506_v16, 16 }
0x159d   : > { %v1294_v3 = vsel %vm3231_vm5, %v1293_v0, 2147483647 }
0x159e   : > { %v1296_v63 = vshra.s32 %v1294_v3, 16  ;;  %v1295_v29 = vand.u32 65535, %v1294_v3 }
0x15a0   : > { %v1298_v31 = vcvt.s32.f32 %v1296_v63  ;;  %v1297_v32 = vcvt.s32.f32 %v1295_v29 }
0x15a2   : > { %1299 = vmin.xlane.f32.xlu0 %v1298_v31 }
0x162f   : > { %v1300_v30 = vpop.xlane.xlu0 %1299 }
0x1630   : > { %vm1301_vm7 = vcmp.eq.f32.partialorder %v1298_v31, %v1300_v30  ;;  %v1306_v35 = vcvt.f32.s32 %v1300_v30 }
0x1631   : > { %v1302_v34 = vsel %vm1301_vm7, %v1297_v32, inf }
0x1632   : > { %1303 = vmin.xlane.f32.xlu1 %v1302_v34  ;;  %v1307_v37 = vshll.u32 %v1306_v35, 16 }
0x16bf   : > { %v1304_v36 = vpop.xlane.xlu1 %1303 }
0x16c0   : > { %v1305_v39 = vcvt.f32.s32 %v1304_v36 }
0x16c2   : > { %v1308_v40 = vadd.s32 %v1307_v37, %v1305_v39 }
0x16c4   : > { %v1317_v41 = vrot.slane %v1308_v40, %v2541_v1  ;;  %v1321_v42 = vrot.slane %v1308_v40, %v2544_v2  ;;  %vm1309_vm13 = vcmp.eq.s32.totalorder %v2506_v16, %v1308_v40 }
0x16c5   : > { %vm2902_vm14 = vmor %vm2872_vm1, %vm1309_vm13 }
0x16c6   : > { %vm1322_vm9 = vcmp.eq.s32.totalorder %v2508_v19, %v1317_v41  ;;  %vm1323_vm10 = vcmp.eq.s32.totalorder %v2547_v4, %v1317_v41  ;;  %vm1324_vm11 = vcmp.eq.s32.totalorder %v2508_v19, %v1321_v42  ;;  %vm1325_vm12 = vcmp.eq.s32.totalorder %v2547_v4, %v1321_v42 }
0x16c7   : > { %v1334_v44 = vsel %vm1322_vm9, %v2526_v48, 1e+30  ;;  %v1335_v45 = vsel %vm1323_vm10, %v2551_v8, 1e+30  ;;  %v1336_v46 = vsel %vm1324_vm11, %v2524_v47, 1e+30 }
0x16c8   : > { %v1337_v49 = vsel %vm1325_vm12, %v2553_v9, 1e+30  ;;  %v1338_v50 = vsel %vm3233_vm8, %v1334_v44, inf  ;;  %v1339_v51 = vsel %vm3233_vm8, %v1335_v45, inf  ;;  %v1347_v52 = vsel %vm3233_vm8, %v1336_v46, inf }
0x16c9   : > { %v1340_v54 = vmin.f32 %v1338_v50, %v1339_v51  ;;  %v1348_v55 = vsel %vm3233_vm8, %v1337_v49, inf }
0x16ca   : > { %v1349_v56 = vmin.f32 %v1347_v52, %v1348_v55 }
0x16cb   : > { %v1341_v57 = vrot.slane %v1340_v54, 4 }
0x16cc   : > { %v1350_v58 = vrot.slane %v1349_v56, 4 }
0x16cd   : > { %v1342_v59 = vmin.f32 %v1340_v54, %v1341_v57 }
0x16ce   : > { %v1351_v60 = vmin.f32 %v1349_v56, %v1350_v58 }
0x16cf   : > { %v1343_v61 = vrot.slane %v1342_v59, 2 }
0x16d0   : > { %v1352_v62 = vrot.slane %v1351_v60, 2 }
0x16d1   : > { %v1344_v5 = vmin.f32 %v1342_v59, %v1343_v61 }
0x16d2   : > { %v1353_v17 = vmin.f32 %v1351_v60, %v1352_v62 }
0x16d3   : > { %v1345_v7 = vrot.slane %v1344_v5, 1 }
0x16d4   : > { %v1354_v20 = vrot.slane %v1353_v17, 1 }
0x16d5   : > { %v1346_v6 = vmin.f32 %v1344_v5, %v1345_v7 }
0x16d6   : > { %v1355_v21 = vmin.f32 %v1353_v17, %v1354_v20 }
0x16d7   : > { %v1356_v0 = vmin.f32 %v1281_v15, %v1346_v6 }
0x16d8   : > { %v1357_v24 = vmin.f32 %v1282_v25, %v1355_v21 }
0x16da   : > { %v1360_v3 = vrot.slane %v1357_v24, 7 }
0x16dc   : > { %v1361_v31 = vsel %vm3232_vm3, %v1360_v3, %v1356_v0 }
0x16dd   : > { %v1363_v29 = vsel %vm2902_vm14, 1e+30, %v1361_v31 }
0x16de   : > { %v1364_v30 = vsel %vm3231_vm5, %v1363_v29, inf }
0x16df   : > { %1365 = vmin.xlane.f32.xlu0 %v1364_v30 }
0x176c   : > { %v2910_v32 = vpop.xlane.xlu0 %1365 }
0x176d   : > { %vm1367_vm15 = vcmp.eq.f32.partialorder %v1363_v29, %v2910_v32 }
0x176e   : > { %v1368_v25 = vsel %vm1367_vm15, %v2506_v16, 16 }
0x176f   : > { %v1369_v15 = vsel %vm3231_vm5, %v1368_v25, 2147483647 }
0x1770   : > { %v1371_v10 = vshra.s32 %v1369_v15, 16  ;;  %v1370_v35 = vand.u32 65535, %v1369_v15 }
0x1772   : > { %v1373_v34 = vcvt.s32.f32 %v1371_v10  ;;  %v1372_v37 = vcvt.s32.f32 %v1370_v35 }
0x1774   : > { %1374 = vmin.xlane.f32.xlu1 %v1373_v34 }
0x1801   : > { %v1375_v36 = vpop.xlane.xlu1 %1374 }
0x1802   : > { %vm1376_vm0 = vcmp.eq.f32.partialorder %v1373_v34, %v1375_v36  ;;  %v1381_v40 = vcvt.f32.s32 %v1375_v36 }
0x1803   : > { %v1377_v39 = vsel %vm1376_vm0, %v1372_v37, inf }
0x1804   : > { %1378 = vmin.xlane.f32.xlu0 %v1377_v39  ;;  %v1382_v42 = vshll.u32 %v1381_v40, 16 }
0x1891   : > { %v1379_v41 = vpop.xlane.xlu0 %1378 }
0x1892   : > { %v1380_v44 = vcvt.f32.s32 %v1379_v41 }
0x1894   : > { %v1383_v45 = vadd.s32 %v1382_v42, %v1380_v44 }
0x1896   : > { %v1392_v46 = vrot.slane %v1383_v45, %v2541_v1  ;;  %v1396_v49 = vrot.slane %v1383_v45, %v2544_v2  ;;  %vm1384_vm10 = vcmp.eq.s32.totalorder %v2506_v16, %v1383_v45 }
0x1897   : > { %vm2932_vm11 = vmor %vm2902_vm14, %vm1384_vm10  ;;  %vm636_vm10 = vcmp.eq.s32.totalorder %v2506_v16, 2 }
0x1898   : > { %vm1397_vm1 = vcmp.eq.s32.totalorder %v2508_v19, %v1392_v46  ;;  %vm1398_vm6 = vcmp.eq.s32.totalorder %v2547_v4, %v1392_v46  ;;  %vm1399_vm7 = vcmp.eq.s32.totalorder %v2508_v19, %v1396_v49  ;;  %vm1400_vm9 = vcmp.eq.s32.totalorder %v2547_v4, %v1396_v49 }
0x1899   : > { %v1409_v50 = vsel %vm1397_vm1, %v2526_v48, 1e+30  ;;  %v1410_v51 = vsel %vm1398_vm6, %v2551_v8, 1e+30  ;;  %v1411_v52 = vsel %vm1399_vm7, %v2524_v47, 1e+30 }
0x189a   : > { %v1412_v54 = vsel %vm1400_vm9, %v2553_v9, 1e+30  ;;  %v1413_v55 = vsel %vm3233_vm8, %v1409_v50, inf  ;;  %v1414_v56 = vsel %vm3233_vm8, %v1410_v51, inf  ;;  %v1422_v57 = vsel %vm3233_vm8, %v1411_v52, inf }
0x189b   : > { %v1415_v58 = vmin.f32 %v1413_v55, %v1414_v56  ;;  %v1423_v59 = vsel %vm3233_vm8, %v1412_v54, inf  ;;  %vm561_vm9 = vcmp.eq.s32.totalorder %v2506_v16, 1  ;;  %v637_v34 = vsel %vm636_vm10, %v2610_v38, 0.0 }
0x189c   : > { %v1424_v60 = vmin.f32 %v1422_v57, %v1423_v59  ;;  %vm1517_vm10 = vcmp.eq.s32.totalorder %v2506_v16, 14 }
0x189d   : > { %v1416_v61 = vrot.slane %v1415_v58, 4 }
0x189e   : > { %v1425_v62 = vrot.slane %v1424_v60, 4 }
0x189f   : > { %v1417_v5 = vmin.f32 %v1415_v58, %v1416_v61 }
0x18a0   : > { %v1426_v17 = vmin.f32 %v1424_v60, %v1425_v62 }
0x18a1   : > { %v1418_v7 = vrot.slane %v1417_v5, 2 }
0x18a2   : > { %v1427_v20 = vrot.slane %v1426_v17, 2 }
0x18a3   : > { %v1419_v6 = vmin.f32 %v1417_v5, %v1418_v7 }
0x18a4   : > { %v1428_v21 = vmin.f32 %v1426_v17, %v1427_v20 }
0x18a5   : > { %v1420_v3 = vrot.slane %v1419_v6, 1 }
0x18a6   : > { %v1429_v31 = vrot.slane %v1428_v21, 1 }
0x18a7   : > { %v1421_v29 = vmin.f32 %v1419_v6, %v1420_v3 }
0x18a8   : > { %v1430_v30 = vmin.f32 %v1428_v21, %v1429_v31 }
0x18a9   : > { %v1431_v15 = vmin.f32 %v1356_v0, %v1421_v29 }
0x18aa   : > { %v1432_v25 = vmin.f32 %v1357_v24, %v1430_v30 }
0x18ac   : > { %v1435_v10 = vrot.slane %v1432_v25, 7 }
0x18ae   : > { %v1436_v35 = vsel %vm3232_vm3, %v1435_v10, %v1431_v15 }
0x18af   : > { %v1438_v36 = vsel %vm2932_vm11, 1e+30, %v1436_v35 }
0x18b0   : > { %v1439_v37 = vsel %vm3231_vm5, %v1438_v36, inf }
0x18b1   : > { %1440 = vmin.xlane.f32.xlu1 %v1439_v37 }
0x193e   : > { %v2940_v39 = vpop.xlane.xlu1 %1440 }
0x193f   : > { %vm1442_vm12 = vcmp.eq.f32.partialorder %v1438_v36, %v2940_v39 }
0x1940   : > { %v1443_v24 = vsel %vm1442_vm12, %v2506_v16, 16  ;;  %vm711_vm12 = vcmp.eq.s32.totalorder %v2506_v16, 3 }
0x1941   : > { %v1444_v0 = vsel %vm3231_vm5, %v1443_v24, 2147483647 }
0x1942   : > { %v1446_v63 = vshra.s32 %v1444_v0, 16  ;;  %v1445_v41 = vand.u32 65535, %v1444_v0 }
0x1944   : > { %v1448_v40 = vcvt.s32.f32 %v1446_v63  ;;  %v1447_v44 = vcvt.s32.f32 %v1445_v41 }
0x1946   : > { %1449 = vmin.xlane.f32.xlu0 %v1448_v40 }
0x19d3   : > { %v1450_v42 = vpop.xlane.xlu0 %1449 }
0x19d4   : > { %vm1451_vm13 = vcmp.eq.f32.partialorder %v1448_v40, %v1450_v42  ;;  %v1456_v46 = vcvt.f32.s32 %v1450_v42  ;;  %v2397_v40 = vmov 0   ;;  %v712_v42 = vsel %vm711_vm12, %v2640_v33, 0.0 }
0x19d5   : > { %v1452_v45 = vsel %vm1451_vm13, %v1447_v44, inf  ;;  %2288 = vset.pattern.permute.xlu0 %v2397_v40  ;;  %2287 = vset.pattern.permute.xlu1 %v2397_v40  ;;  %vm861_vm13 = vcmp.eq.s32.totalorder %v2506_v16, 5  ;;  %vm1587_vm12 = vcmp.lt.s32.totalorder %v2547_v4, %v2506_v16 }
0x19d6   : > { %1453 = vmin.xlane.f32.xlu1 %v1452_v45  ;;  %v1457_v50 = vshll.u32 %v1456_v46, 16 }
0x1a63   : > { %v1454_v49 = vpop.xlane.xlu1 %1453 }
0x1a64   : > { %v1455_v51 = vcvt.f32.s32 %v1454_v49 }
0x1a66   : > { %v1458_v52 = vadd.s32 %v1457_v50, %v1455_v51 }
0x1a68   : > { %v1467_v54 = vrot.slane %v1458_v52, %v2541_v1  ;;  %v1471_v55 = vrot.slane %v1458_v52, %v2544_v2  ;;  %vm1459_vm6 = vcmp.eq.s32.totalorder %v2506_v16, %v1458_v52 }
0x1a69   : > { %vm1460_vm7 = vmor %vm2932_vm11, %vm1459_vm6  ;;  %vm786_vm11 = vcmp.eq.s32.totalorder %v2506_v16, 4  ;;  %vm1311_vm6 = vcmp.eq.s32.totalorder %v2506_v16, 11 }
0x1a6a   : > { %vm1472_vm14 = vcmp.eq.s32.totalorder %v2508_v19, %v1467_v54  ;;  %vm1473_vm15 = vcmp.eq.s32.totalorder %v2547_v4, %v1467_v54  ;;  %vm1474_vm0 = vcmp.eq.s32.totalorder %v2508_v19, %v1471_v55  ;;  %vm1475_vm1 = vcmp.eq.s32.totalorder %v2547_v4, %v1471_v55 }
0x1a6b   : > { %v1484_v56 = vsel %vm1472_vm14, %v2526_v48, 1e+30  ;;  %v1485_v57 = vsel %vm1473_vm15, %v2551_v8, 1e+30  ;;  %v1486_v58 = vsel %vm1474_vm0, %v2524_v47, 1e+30 }
0x1a6c   : > { %v1487_v59 = vsel %vm1475_vm1, %v2553_v9, 1e+30  ;;  %v1488_v60 = vsel %vm3233_vm8, %v1484_v56, inf  ;;  %v1489_v61 = vsel %vm3233_vm8, %v1485_v57, inf  ;;  %v1497_v62 = vsel %vm3233_vm8, %v1486_v58, inf }
0x1a6d   : > { %v1490_v5 = vmin.f32 %v1488_v60, %v1489_v61  ;;  %v1498_v17 = vsel %vm3233_vm8, %v1487_v59, inf  ;;  %v787_v45 = vsel %vm786_vm11, %v2670_v28, 0.0  ;;  %vm936_vm14 = vcmp.eq.s32.totalorder %v2506_v16, 6 }
0x1a6e   : > { %v1499_v7 = vmin.f32 %v1497_v62, %v1498_v17  ;;  %vm1086_vm15 = vcmp.eq.s32.totalorder %v2506_v16, 8  ;;  %vm1161_vm0 = vcmp.eq.s32.totalorder %v2506_v16, 9  ;;  %vm1236_vm1 = vcmp.eq.s32.totalorder %v2506_v16, 10 }
0x1a6f   : > { %v1491_v20 = vrot.slane %v1490_v5, 4  ;;  %v1087_v28 = vsel %vm1086_vm15, %v2790_v12, 0.0  ;;  %vm1567_vm11 = vcmp.lt.s32.totalorder %v2547_v4, 15 }
0x1a70   : > { %v1500_v6 = vrot.slane %v1499_v7, 4 }
0x1a71   : > { %v1492_v21 = vmin.f32 %v1490_v5, %v1491_v20 }
0x1a72   : > { %v1501_v48 = vmin.f32 %v1499_v7, %v1500_v6 }
0x1a73   : > { %v1493_v3 = vrot.slane %v1492_v21, 2 }
0x1a74   : > { %v1502_v8 = vrot.slane %v1501_v48, 2 }
0x1a75   : > { %v1494_v31 = vmin.f32 %v1492_v21, %v1493_v3 }
0x1a76   : > { %v1503_v47 = vmin.f32 %v1501_v48, %v1502_v8 }
0x1a77   : > { %v1495_v29 = vrot.slane %v1494_v31, 1 }
0x1a78   : > { %v1504_v9 = vrot.slane %v1503_v47, 1 }
0x1a79   : > { %v1496_v30 = vmin.f32 %v1494_v31, %v1495_v29 }
0x1a7a   : > { %v1505_v10 = vmin.f32 %v1503_v47, %v1504_v9 }
0x1a7b   : > { %v1506_v36 = vmin.f32 %v1431_v15, %v1496_v30  ;;  %v486_v15 = vsel %vm456_vm4, %v2535_v53, 0.0  ;;  %vm1011_vm4 = vcmp.eq.s32.totalorder %v2506_v16, 7  ;;  %v937_v53 = vsel %vm936_vm14, %v2730_v14, 0.0 }
0x1a7c   : > { %v1507_v35 = vmin.f32 %v1432_v25, %v1505_v10  ;;  %v562_v25 = vsel %vm561_vm9, %v2580_v43, 0.0  ;;  %v862_v43 = vsel %vm861_vm13, %v2700_v27, 0.0  ;;  %v1012_v33 = vsel %vm1011_vm4, %v2760_v11, 0.0 }
0x1a7d   : > { %v563_v41 = vadd.f32 %v562_v25, %v486_v15  ;;  %v1162_v27 = vsel %vm1161_vm0, %v2820_v13, 0.0  ;;  %v1237_v14 = vsel %vm1236_vm1, %v2850_v18, 0.0  ;;  %v1312_v11 = vsel %vm1311_vm6, %v2880_v26, 0.0  ;;  %v1864_v26 = vld [vmem:[%s3226_s1 + $0x8] sm:$0x3] }
0x1a7e   : > { %v1510_v37 = vrot.slane %v1507_v35, 7  ;;  %vm1461_vm9 = vcmp.eq.s32.totalorder %v2506_v16, 13 }
0x1a7f   : > { %v638_v44 = vadd.f32 %v637_v34, %v563_v41  ;;  %v1462_v57 = vsel %vm1461_vm9, %v2940_v39, 0.0  ;;  %v2398_v39 = vmov 1966171168   ;;  %vm1586_vm9 = vcmp.lt.s32.totalorder %v2508_v19, %v2506_v16 }
0x1a80   : > { %v1511_v24 = vsel %vm3232_vm3, %v1510_v37, %v1506_v36  ;;  %v1545_v5 = vunpack.c.l.s4 %v2398_v39  ;;  %v2399_v39 = vmov 0.0  }
0x1a81   : > { %v1513_v0 = vsel %vm1460_vm7, 1e+30, %v1511_v24  ;;  %v713_v46 = vadd.f32 %v712_v42, %v638_v44  ;;  %vm1386_vm7 = vcmp.eq.s32.totalorder %v2506_v16, 12 }
0x1a82   : > { %v1514_v63 = vsel %vm3231_vm5, %v1513_v0, inf  ;;  %v1387_v12 = vsel %vm1386_vm7, %v2910_v32, 0.0  ;;  %v1863_v32 = vld [vmem:[%s3226_s1] sm:$0xff]  ;;  %v1546_v17 = vunpack.c.0.s8 %v1545_v5 }
0x1a83   : > { %1515 = vmin.xlane.f32.xlu0 %v1514_v63  ;;  %v788_v49 = vadd.f32 %v787_v45, %v713_v46 }
0x1a85   : > { %v863_v38 = vadd.f32 %v862_v43, %v788_v49 }
0x1a87   : > { %v938_v50 = vadd.f32 %v937_v53, %v863_v38 }
0x1a89   : > { %v1013_v51 = vadd.f32 %v1012_v33, %v938_v50 }
0x1a8b   : > { %v1088_v52 = vadd.f32 %v1087_v28, %v1013_v51 }
0x1a8d   : > { %v1163_v54 = vadd.f32 %v1162_v27, %v1088_v52 }
0x1a8f   : > { %v1238_v55 = vadd.f32 %v1237_v14, %v1163_v54 }
0x1a91   : > { %v1313_v56 = vadd.f32 %v1312_v11, %v1238_v55  ;;  %v3041_v11 = vadd.s32 16, %v2508_v19 }
0x1a93   : > { %v1388_v58 = vadd.f32 %v1387_v12, %v1313_v56 }
0x1a95   : > { %v1463_v13 = vadd.f32 %v1462_v57, %v1388_v58 }
0x1b10   : > { %v1516_v59 = vpop.xlane.xlu0 %1515 }
0x1b11   : > { %v1518_v60 = vsel %vm1517_vm10, %v1516_v59, 0.0 }
0x1b12   : > { %v1519_v18 = vadd.f32 %v1518_v60, %v1463_v13 }
0x1b14   : > { %v1535_v61 = vrot.slane %v1519_v18, %v2544_v2  ;;  %v1524_v62 = vrot.slane %v1519_v18, %v2541_v1  ;;  %v1549_v2 = vsub.s32 %v1546_v17, %v2508_v19 }
0x1b16   : > { %1541 = vbcast.lane.b32.xlu0 %v1535_v61, 264  ;;  %1530 = vbcast.lane.b32.xlu1 %v1524_v62, 264  ;;  %v1550_v7 = vrot.slane %v1519_v18, %v1549_v2 }
0x1b18   : > { %v1551_v20 = vcombine.high %v1550_v7, %v1550_v7  ;;  %v1558_v21 = vrot.slane %v1550_v7, %v1549_v2 }
0x1b1a   : > { %1872 = vperm.xlu0 %2288, %v1864_v26   ;;  %1526 = vbcast.lane.b32.xlu1 %v1524_v62, 256  ;;  %v1565_v6 = vrot.slane %v1551_v20, %v1549_v2  ;;  %v3011_v3 = vrot.slane %v1558_v21, %v2541_v1 }
0x1b1c   : > { %v3006_v48 = vrot.slane %v1565_v6, %v2541_v1 }
0x1b1e   : > { %1537 = vbcast.lane.b32.xlu1 %v1535_v61, 256 }
0x1b22   : > { %1867 = vperm.xlu1 %2287, %v1863_v32  }
0x1b88   : > { %v1542_v8 = vpop.permute.xlu0 %1541  ;;  %v1531_v31 = vpop.permute.xlu1 %1530 }
0x1b89   : > { %vm1581_vm13 = vcmp.gt.f32.partialorder %v1542_v8, %v3006_v48  ;;  %vm1585_vm14 = vcmp.eq.f32.partialorder %v1542_v8, %v3006_v48  ;;  %vm1583_vm15 = vcmp.eq.f32.partialorder %v1531_v31, %v3011_v3  ;;  %vm1579_vm1 = vcmp.gt.f32.partialorder %v1531_v31, %v3011_v3  ;;  %v1910_v8 = vld [vmem:[%s3227_s2 + $0x8] sm:$0x3] }
0x1b8a   : > { %vm1591_vm4 = vmand %vm1585_vm14, %vm1587_vm12  ;;  %v1732_v31 = vmul.u32 2, %v2508_v19 }
0x1b8b   : > { %vm1595_vm0 = vmor %vm1581_vm13, %vm1591_vm4 }
0x1b8c   : > { %vm1603_vm6 = vmand %vm1595_vm0, %vm1567_vm11  ;;  %v1527_v47 = vpop.permute.xlu1 %1526 }
0x1b8d   : > { %vm1589_vm7 = vmand %vm1583_vm15, %vm1587_vm12  ;;  %vm1582_vm10 = vcmp.eq.f32.partialorder %v1527_v47, %v3011_v3  ;;  %vm1578_vm5 = vcmp.gt.f32.partialorder %v1527_v47, %v3011_v3  ;;  %v1607_v30 = vsel %vm1603_vm6, 1, %v2397_v40  ;;  %vm3264_vm15 = vcmask 130048  }
0x1b8e   : > { %vm1593_vm2 = vmor %vm1579_vm1, %vm1589_vm7  ;;  %v1733_v47 = vmul.u32 2, %v2547_v4 }
0x1b8f   : > { %vm1601_vm3 = vmand %vm1593_vm2, %vm1567_vm11 }
0x1b90   : > { %v1605_v29 = vsel %vm1601_vm3, 1, %v2397_v40  ;;  %vm1588_vm14 = vmand %vm1582_vm10, %vm1586_vm9  ;;  %v1538_v9 = vpop.permute.xlu1 %1537 }
0x1b91   : > { %vm1592_vm8 = vmor %vm1578_vm5, %vm1588_vm14  ;;  %vm1580_vm13 = vcmp.gt.f32.partialorder %v1538_v9, %v3006_v48  ;;  %vm1584_vm4 = vcmp.eq.f32.partialorder %v1538_v9, %v3006_v48  ;;  %v1609_v35 = vsel %vm3264_vm15, %v1605_v29, 0  ;;  %vm1520_vm5 = vcmp.lt.s32.totalorder %v2506_v16, 15 }
0x1b92   : > { %v1604_v10 = vsel %vm1592_vm8, 1, %v2397_v40  ;;  %vm1590_vm12 = vmand %vm1584_vm4, %vm1586_vm9  ;;  %vm3268_vm8 = vcmask 1041409   ;;  %v2400_v9 = vmov 0.0|0.0  }
0x1b93   : > { %vm3265_vm0 = vmmov %vm3264_vm15  ;;  %2232 = vmatprep.subr.bf16.mxu1 %v2400_v9  ;;  %2229 = vmatprep.subr.bf16.mxu0 %v2400_v9 }
0x1b94   : > { %v1608_v36 = vsel %vm3265_vm0, %v1604_v10, 0  ;;  %vm1594_vm1 = vmor %vm1580_vm13, %vm1590_vm12  ;;  %v1736_v10 = vadd.s32 1, %v1733_v47 }
0x1b95   : > { %v1610_v37 = vadd.s32 %v1609_v35, %v1608_v36  ;;  %v1606_v24 = vsel %vm1594_vm1, 1, %v2397_v40  ;;  %vm3266_vm2 = vmmov %vm3265_vm0  ;;  %v1734_v35 = vmul.u32 2, %v3041_v11  ;;  %v2403_v36 = vmov 1.0|1.0  }
0x1b96   : > { %v1618_v0 = vsel %vm3266_vm2, %v1607_v30, 0  ;;  %vm3267_vm3 = vmmov %vm3265_vm0  ;;  %vm1677_vm2 = vcmask 125952   ;;  %v1735_v30 = vadd.s32 1, %v1732_v31 }
0x1b97   : > { %v1617_v63 = vsel %vm3267_vm3, %v1606_v24, 0  ;;  %v1611_v25 = vrot.slane %v1610_v37, 4  ;;  %vm3269_vm7 = vmmov %vm3265_vm0 }
0x1b98   : > { %v1619_v15 = vadd.s32 %v1618_v0, %v1617_v63  ;;  %vm3270_vm9 = vmmov %vm3265_vm0 }
0x1b99   : > { %v1612_v34 = vadd.s32 %v1611_v25, %v1610_v37  ;;  %v1873_v55 = vpop.permute.xlu0 %1872  ;;  %vm3271_vm1 = vmmov %vm3265_vm0 }
0x1b9a   : > { %v1620_v41 = vrot.slane %v1619_v15, 4  ;;  %vm1876_vm13 = vcmp.le.f32.partialorder %v3011_v3, %v1873_v55 }
0x1b9b   : > { %v1613_v42 = vrot.slane %v1612_v34, 2  ;;  %vm1882_vm3 = vmand %vm1876_vm13, %vm1520_vm5 }
0x1b9c   : > { %v1621_v44 = vadd.s32 %v1620_v41, %v1619_v15  ;;  %v2160_v5 = vsel %vm1882_vm3, 1.0, %v2399_v39  ;;  %v1762_v15 = vadd.s32 4294967280, %v2506_v16 }
0x1b9d   : > { %v1614_v45 = vadd.s32 %v1613_v42, %v1612_v34 }
0x1b9e   : > { %v1622_v46 = vrot.slane %v1621_v44, 2 }
0x1b9f   : > { %v1615_v43 = vrot.slane %v1614_v45, 1 }
0x1ba0   : > { %v1623_v49 = vadd.s32 %v1622_v46, %v1621_v44 }
0x1ba1   : > { %v1616_v38 = vadd.s32 %v1615_v43, %v1614_v45  ;;  %v1868_v57 = vpop.permute.xlu1 %1867  ;;  %v3093_v45 = vsub.s32 %v1762_v15, %v2508_v19 }
0x1ba2   : > { %v1624_v53 = vrot.slane %v1623_v49, 1  ;;  %vm1875_vm15 = vcmp.le.f32.partialorder %v3011_v3, %v1868_v57 }
0x1ba4   : > { %v1625_v33 = vadd.s32 %v1624_v53, %v1623_v49 }
0x1ba6   : > { %v1626_v40 = vsel %vm3268_vm8, %v1625_v33, %v1616_v38  ;;  %vm1878_vm8 = vcmp.le.f32.partialorder %v3006_v48, %v1873_v55 }
0x1ba7   : > { %v1627_v50 = vsel %vm1520_vm5, %v1626_v40, 36 }
0x1ba8   : > { %v1635_v28 = vrot.slane %v1627_v50, %v1549_v2 }
0x1baa   : > { %v1643_v51 = vrot.slane %v1635_v28, %v1549_v2  ;;  %v1636_v27 = vcombine.high %v1635_v28, %v1635_v28 }
0x1bac   : > { %v1654_v52 = vrot.slane %v1643_v51, %v2541_v1  ;;  %v1650_v14 = vrot.slane %v1636_v27, %v1549_v2 }
0x1bae   : > { %vm1660_vm11 = vcmp.eq.s32.totalorder %v2547_v4, %v1654_v52  ;;  %vm1659_vm6 = vcmp.eq.s32.totalorder %v2508_v19, %v1654_v52  ;;  %v1658_v54 = vrot.slane %v1650_v14, %v2541_v1  ;;  %vm1661_vm12 = vcmp.eq.s32.totalorder %v3041_v11, %v1654_v52 }
0x1baf   : > { %v1666_v12 = vsel %vm1660_vm11, %v3011_v3, 0.0  ;;  %v1665_v56 = vsel %vm1659_vm6, %v3011_v3, 0.0  ;;  %v1667_v62 = vsel %vm1661_vm12, %v3011_v3, 0.0  ;;  %vm1881_vm11 = vmand %vm1875_vm15, %vm1520_vm5  ;;  %vm1877_vm6 = vcmp.le.f32.partialorder %v3006_v48, %v1868_v57  ;;  %v1909_v3 = vld [vmem:[%s3227_s2] sm:$0xff] }
0x1bb0   : > { %v1674_v58 = vsel %vm3269_vm7, %v1666_v12, 0.0  ;;  %v1671_v13 = vsel %vm3270_vm9, %v1665_v56, 0.0  ;;  %vm1663_vm10 = vcmp.eq.s32.totalorder %v2547_v4, %v1658_v54  ;;  %vm1662_vm14 = vcmp.eq.s32.totalorder %v2508_v19, %v1658_v54  ;;  %vm1884_vm7 = vmand %vm1878_vm8, %vm1520_vm5 }
0x1bb1   : > { %1675 = vadd.xlane.f32.xlu0 %v1674_v58  ;;  %1672 = vadd.xlane.f32.xlu1 %v1671_v13  ;;  %v1669_v1 = vsel %vm1663_vm10, %v3006_v48, 0.0  ;;  %v1668_v59 = vsel %vm1662_vm14, %v3006_v48, 0.0  ;;  %vm1664_vm4 = vcmp.eq.s32.totalorder %v3041_v11, %v1658_v54  ;;  %v1678_v32 = vsel %vm1677_vm2, %v1667_v62, 0.0  ;;  %vm1883_vm9 = vmand %vm1877_vm6, %vm1520_vm5 }
0x1bb2   : > { %v1684_v60 = vsel %vm3265_vm0, %v1669_v1, 0.0  ;;  %v1681_v18 = vsel %vm3271_vm1, %v1668_v59, 0.0  ;;  %v1670_v61 = vsel %vm1664_vm4, %v3006_v48, 0.0  ;;  %v2159_v17 = vsel %vm1881_vm11, 1.0, %v2399_v39  ;;  %vm3273_vm14 = vmmov %vm3265_vm0 }
0x1bb3   : > { %v1687_v26 = vsel %vm1677_vm2, %v1670_v61, 0.0  ;;  %vm3272_vm10 = vcmask 123904   ;;  %v1893_v7 = vsel %vm3273_vm14, %v2159_v17, 0.0  ;;  %v2162_v20 = vsel %vm1884_vm7, 1.0, %v2399_v39  ;;  %vm3275_vm4 = vmmov %vm3265_vm0 }
0x1bb4   : > { %v1896_v2 = vsel %vm3272_vm10, %v2160_v5, 0.0  ;;  %v2161_v6 = vsel %vm1883_vm9, 1.0, %v2399_v39  ;;  %vm3274_vm13 = vmmov %vm3272_vm10  ;;  %vm1937_vm5 = vcmask 1041408   ;;  %v2233_v29 = vpack.c.bf16 %v1910_v8, %v1909_v3 }
0x1bb5   : > { %1685 = vadd.xlane.f32.xlu1 %v1684_v60  ;;  %1682 = vadd.xlane.f32.xlu0 %v1681_v18  ;;  %v1902_v21 = vsel %vm3274_vm13, %v2162_v20, 0.0  ;;  %v1899_v48 = vsel %vm3275_vm4, %v2161_v6, 0.0  ;;  %vm2401_vm12 = vmmov 1   ;;  %vm1738_vm0 = vcmp.eq.s32.totalorder %v2506_v16, %v1735_v30 }
0x1bb6   : > { %vm2234_vm15 = vmpackc.low %vm1937_vm5, %vm2401_vm12  ;;  %vm1739_vm1 = vcmp.eq.s32.totalorder %v2506_v16, %v1736_v10  ;;  %vm2402_vm2 = vmmov 0   ;;  %v1737_v4 = vadd.s32 1, %v1734_v35  ;;  %vm1787_vm11 = vcmask 1043456  }
0x1bb7   : > { %2235 = vmatpush3.bf16.msk.msra.mxu1 %vm2234_vm15, %v2233_v29  ;;  %2214 = vmatprep.mubr.msk.f32.mxu1 %vm2402_vm2, %v2399_v39  ;;  %vm2230_vm3 = vmpackc.low %vm1739_vm1, %vm1738_vm0  ;;  %vm1934_vm14 = vcmask 80896  }
0x1bb8   : > { %2207 = vmatprep.mubr.msk.f32.mxu0 %vm2402_vm2, %v2399_v39  ;;  %2231 = vmatpush3.bf16.msk.msra.mxu0 %vm2230_vm3, %v2403_v36  ;;  %vm1740_vm8 = vcmp.eq.s32.totalorder %v2506_v16, %v1737_v4  ;;  %vm3276_vm2 = vcmask 130112  }
0x1bb9   : > { %1688 = vadd.xlane.f32.xlu1 %v1687_v26  ;;  %1679 = vadd.xlane.f32.xlu0 %v1678_v32  ;;  %v2154_v37 = vsel %vm1740_vm8, 1.0, %v2399_v39  ;;  %vm3277_vm3 = vmmov %vm3276_vm2  ;;  %vm3278_vm8 = vcmask 1041409  }
0x1bba   : > { %2205 = vmatprep.subr.mxu0 %v2399_v39 }
0x1bbc   : > { %2206 = vmatpush3.msk.msra.mxu0 %vm1787_vm11, %v2154_v37 }
0x1bbd   : > { %1897 = vadd.xlane.f32.xlu1 %v1896_v2  ;;  %1894 = vadd.xlane.f32.xlu0 %v1893_v7 }
0x1bc1   : > { %1903 = vadd.xlane.f32.xlu1 %v1902_v21  ;;  %1900 = vadd.xlane.f32.xlu0 %v1899_v48 }
0x1c3e   : > { %v1676_v24 = vpop.xlane.xlu0 %1675  ;;  %v1673_v0 = vpop.xlane.xlu1 %1672 }
0x1c3f   : > { %2289 = vrsqrt.f32 %v1676_v24  ;;  %vm1699_vm6 = vcmp.eq.f32.partialorder %v1676_v24, inf  ;;  %vm1701_vm7 = vcmp.eq.f32.partialorder %v1676_v24, 0.0  ;;  %v1702_v44 = vand.u32 2147483648, %v1676_v24 }
0x1c40   : > { %2291 = vrsqrt.f32 %v1673_v0  ;;  %vm1692_vm9 = vcmp.eq.f32.partialorder %v1673_v0, inf  ;;  %vm1694_vm10 = vcmp.eq.f32.partialorder %v1673_v0, 0.0  ;;  %v1695_v16 = vand.u32 2147483648, %v1673_v0 }
0x1c42   : > { %v1683_v63 = vpop.xlane.xlu0 %1682  ;;  %v1686_v25 = vpop.xlane.xlu1 %1685 }
0x1c43   : > { %2293 = vrsqrt.f32 %v1683_v63  ;;  %vm1713_vm13 = vcmp.eq.f32.partialorder %v1683_v63, inf  ;;  %vm1715_vm4 = vcmp.eq.f32.partialorder %v1683_v63, 0.0  ;;  %v1716_v28 = vand.u32 2147483648, %v1683_v63 }
0x1c44   : > { %2295 = vrsqrt.f32 %v1686_v25  ;;  %vm1720_vm5 = vcmp.eq.f32.partialorder %v1686_v25, inf  ;;  %vm1722_vm12 = vcmp.eq.f32.partialorder %v1686_v25, 0.0  ;;  %v1723_v27 = vand.u32 2147483648, %v1686_v25 }
0x1c46   : > { %v3086_v34 = vpop.xlane.xlu0 %1679  ;;  %v3088_v41 = vpop.xlane.xlu1 %1688 }
0x1c47   : > { %2297 = vrsqrt.f32 %v3086_v34  ;;  %vm1706_vm15 = vcmp.eq.f32.partialorder %v3086_v34, inf  ;;  %vm1708_vm0 = vcmp.eq.f32.partialorder %v3086_v34, 0.0  ;;  %v1709_v60 = vand.u32 2147483648, %v3086_v34 }
0x1c48   : > { %2299 = vrsqrt.f32 %v3088_v41  ;;  %vm1727_vm1 = vcmp.eq.f32.partialorder %v3088_v41, inf  ;;  %v1730_v2 = vand.u32 2147483648, %v3088_v41  ;;  %vm1729_vm11 = vcmp.eq.f32.partialorder %v3088_v41, 0.0 }
0x1c49   : > { %v2290_v42 = vpop.eup %2289 }
0x1c4a   : > { %v2292_v46 = vpop.eup %2291  ;;  %v1698_v43 = vmul.f32 %v2290_v42, %v1676_v24  ;;  %v1895_v49 = vpop.xlane.xlu0 %1894 }
0x1c4b   : > { %v1898_v53 = vpop.xlane.xlu1 %1897  ;;  %v1691_v38 = vmul.f32 %v2292_v46, %v1673_v0  ;;  %v1905_v33 = vsub.f32 16.0, %v1895_v49 }
0x1c4c   : > { %v1906_v40 = vsub.f32 16.0, %v1898_v53  ;;  %v1700_v50 = vsel %vm1699_vm6, %v1676_v24, %v1698_v43  ;;  %vm1767_vm6 = vcmask 195712  }
0x1c4d   : > { %v2294_v51 = vpop.eup %2293  ;;  %v1693_v19 = vsel %vm1692_vm9, %v1673_v0, %v1691_v38  ;;  %v1703_v14 = vsel %vm1701_vm7, %v1702_v44, %v1700_v50  ;;  %v1918_v11 = vrot.slane %v1905_v33, %v2513_v22  ;;  %vm3279_vm7 = vmmov %vm3276_vm2 }
0x1c4e   : > { %v2296_v52 = vpop.eup %2295  ;;  %v1712_v54 = vmul.f32 %v2294_v51, %v1683_v63  ;;  %v1901_v55 = vpop.xlane.xlu0 %1900  ;;  %v1922_v57 = vrot.slane %v1906_v40, %v2516_v23  ;;  %v1696_v1 = vsel %vm1694_vm10, %v1695_v16, %v1693_v19  ;;  %v1760_v7 = vrot.slane %v1703_v14, %v2516_v23  ;;  %vm3280_vm9 = vmmov %vm3276_vm2 }
0x1c4f   : > { %v1904_v12 = vpop.xlane.xlu1 %1903  ;;  %v1719_v56 = vmul.f32 %v2296_v52, %v1686_v25  ;;  %v1907_v58 = vsub.f32 16.0, %v1901_v55  ;;  %v1756_v48 = vrot.slane %v1696_v1, %v2513_v22  ;;  %vm1784_vm10 = vcmask 162816  }
0x1c50   : > { %v1908_v13 = vsub.f32 16.0, %v1904_v12  ;;  %v1714_v59 = vsel %vm1713_vm13, %v1683_v63, %v1712_v54  ;;  %v1923_v6 = vsel %vm3276_vm2, %v1922_v57, %v1918_v11  ;;  %vm3281_vm13 = vmmov %vm3278_vm8 }
0x1c51   : > { %v2298_v18 = vpop.eup %2297  ;;  %v1717_v61 = vsel %vm1715_vm4, %v1716_v28, %v1714_v59  ;;  %v1721_v62 = vsel %vm1720_vm5, %v1686_v25, %v1719_v56  ;;  %v1927_v26 = vrot.slane %v1907_v58, %v2513_v22 }
0x1c52   : > { %v1931_v32 = vrot.slane %v1908_v13, %v2516_v23  ;;  %v2300_v39 = vpop.eup %2299  ;;  %v1724_v5 = vsel %vm1722_vm12, %v1723_v27, %v1721_v62  ;;  %v1705_v17 = vmul.f32 %v2298_v18, %v3086_v34  ;;  %v1772_v31 = vrot.slane %v1717_v61, %v2513_v22 }
0x1c53   : > { %v1726_v20 = vmul.f32 %v2300_v39, %v3088_v41  ;;  %v1776_v47 = vrot.slane %v1724_v5, %v2516_v23  ;;  %v1761_v23 = vsel %vm3279_vm7, %v1760_v7, %v1756_v48 }
0x1c54   : > { %v1932_v21 = vsel %vm3277_vm3, %v1931_v32, %v1927_v26  ;;  %v1707_v3 = vsel %vm1706_vm15, %v3086_v34, %v1705_v17 }
0x1c55   : > { %v1933_v8 = vsel %vm3278_vm8, %v1932_v21, %v1923_v6  ;;  %v1728_v29 = vsel %vm1727_vm1, %v3088_v41, %v1726_v20  ;;  %v1710_v9 = vsel %vm1708_vm0, %v1709_v60, %v1707_v3  ;;  %v1777_v4 = vsel %vm3280_vm9, %v1776_v47, %v1772_v31 }
0x1c56   : > { %2215 = vmatmul.mubr.msk.f32.vlgmr.msra.gmra.mrb[2].mxu1 %vm1934_vm14, %v1933_v8  ;;  %v1731_v30 = vsel %vm1729_vm11, %v1730_v2, %v1728_v29  ;;  %v1766_v22 = vrot.slane %v1710_v9, %v3093_v45  ;;  %vm2011_vm14 = vcmask 320512  }
0x1c57   : > { %v1781_v10 = vrot.slane %v1731_v30, %v3093_v45 }
0x1c58   : > { %v1768_v35 = vsel %vm1767_vm6, %v1766_v22, %v1761_v23 }
0x1c59   : > { %v1782_v36 = vsel %vm1767_vm6, %v1781_v10, %v1777_v4 }
0x1c5a   : > { %v1783_v37 = vsel %vm3281_vm13, %v1782_v36, %v1768_v35 }
0x1c5b   : > { %2208 = vmatmul.mubr.msk.f32.vlgmr.msra.gmra.mrb[2].mxu0 %vm1784_vm10, %v1783_v37 }
0x1d29   : > { %v2007_v24 = vpop.f32.mrb[2].mxu1 }
0x1d2a   : > { %2012 = vst.msk [vmem:[%s201_s23] sm:$0x3] %vm2011_vm14, %v2007_v24  ;;  %v2216_v0 = vpop.f32.mrb[3].mxu1 }
0x1d2b   : > { %2314 = shalt.err (!%p2311_p3)
}
0x1d2c   : > { %s2315_s12 = scalar_lea.hbm %s3145_s30, 32  ;;  %s2319_s23 = scalar_lea.hbm %s3229_s4, 64 }
0x1d2d   : > { %p2316_p4 = scmp.ne.s32.totalorder %s3145_s30, %s2315_s12  ;;  %p2320_p9 = scmp.lt.u32.totalorder %s3145_s30, %s3229_s4 }
0x1d2e   : > { %p2321_p10 = scmp.lt.u32.totalorder %s2319_s23, %s2315_s12  ;;  %p2323_p12 = scmp.lt.u32.totalorder %s2315_s12, %s3145_s30 }
0x1d2f   : > { %p2317_p7 = pnand %p2316_p4, %p2469_p5 }
0x1d30   : > { %p2322_p11 = por %p2321_p10, %p2320_p9 }
0x1d31   : > { %p2318_p8 = pneg %p2317_p7 }
0x1d32   : > { %p2324_p13 = por %p2323_p12, %p2322_p11 }
0x1d34   : > { %p2325_p0 = pnand %p2324_p13, %p2318_p8 }
0x1d36   : > { %2328 = shalt.err (!%p2325_p0)
}
0x1d37   : > { %2237 = dma.vmem_to_hbm [thread:$0]  (%p2469_p5), %s3147_s27, 32, %s3145_s30, %s2019_s7   ;;  %vm1861_vm4 = vcmask 648192   ;;  %v1857_v63 = vpop.f32.mrb[2].mxu0 }
0x1d38   : > { %s3179_s10 = scalar_lea.hbm %s3228_s3, %s2167_s22  ;;  %1862 = vst.msk [vmem:[%s3149_s5] sm:$0x3] %vm1861_vm4, %v1857_v63  ;;  %v2209_v25 = vpop.f32.mrb[3].mxu0  ;;  %s2014_s11 = scalar_lea.sflag [#allocation3], %s3136_s14 }
0x1d39   : > { %s2329_s12 = scalar_lea.vmem %s3183_s6, 32  ;;  %s2405_s19 = smov [#allocation2]  }
0x1d3a   : > { %p2330_p1 = scmp.ne.s32.totalorder %s3183_s6, %s2329_s12  ;;  %s2333_s27 = sshll.u32 %s2405_s19, 4  ;;  %s2334_s27 = int_to_ptr.vmem [resolvable:$false] %s2333_s27 }
0x1d3b   : > { %s2335_s22 = scalar_lea.vmem %s2334_s27, 64  ;;  %p2336_p4 = scmp.lt.s32.totalorder %s3183_s6, %s2334_s27 }
0x1d3c   : > { %p2331_p2 = pnand %p2330_p1, %p2469_p5  ;;  %p2337_p7 = scmp.lt.s32.totalorder %s2335_s22, %s2329_s12 }
0x1d3e   : > { %p2332_p3 = pneg %p2331_p2  ;;  %p2338_p8 = por %p2337_p7, %p2336_p4 }
0x1d40   : > { %p2339_p9 = pnand %p2338_p8, %p2332_p3 }
0x1d42   : > { %2342 = shalt.err (!%p2339_p9)
}
0x1d43   : > { %s2343_s14 = scalar_lea.hbm %s3179_s10, 32  ;;  %s2347_s7 = scalar_lea.hbm %s3228_s3, 64 }
0x1d44   : > { %p2344_p10 = scmp.ne.s32.totalorder %s3179_s10, %s2343_s14  ;;  %p2348_p13 = scmp.lt.u32.totalorder %s3179_s10, %s3228_s3 }
0x1d45   : > { %p2349_p0 = scmp.lt.u32.totalorder %s2347_s7, %s2343_s14  ;;  %p2351_p2 = scmp.lt.u32.totalorder %s2343_s14, %s3179_s10 }
0x1d46   : > { %p2345_p11 = pnand %p2344_p10, %p2469_p5 }
0x1d47   : > { %p2350_p1 = por %p2349_p0, %p2348_p13 }
0x1d48   : > { %p2346_p12 = pneg %p2345_p11 }
0x1d49   : > { %p2352_p3 = por %p2351_p2, %p2350_p1 }
0x1d4b   : > { %p2353_p4 = pnand %p2352_p3, %p2346_p12 }
0x1d4d   : > { %2356 = shalt.err (!%p2353_p4)
}
0x1d4e   : > { %2236 = dma.vmem_to_hbm [thread:$0]  (%p2469_p5), %s3183_s6, 32, %s3179_s10, %s2014_s11  }
0x1d4f PF: > { %p2247_p7 = scmp.ge.s32.totalorder %s2395_s18, 2  ;;  %s2057_s23 = sand.u32 1, %s2383_s15  }
0x1d50   : > { %s2058_s28 = scalar_lea.sflag [#allocation3], %s2057_s23 }
0x1d51   : > { %p2241_p8 = pnand %p2247_p7, %p2473_p6 }
0x1d53   : > { %2374 = dma.done.wait (!%p2241_p8), %s2058_s28, 32  }
0x1d54   : > { %2376 = vsyncadd (!%p2241_p8), %s2058_s28, 4294967264  ;;  %s2067_s29 = scalar_lea.sflag [#allocation5], %s2057_s23 }
0x1d55   : > { %2378 = dma.done.wait (!%p2241_p8), %s2067_s29, 32  }
0x1d56   : > { %2380 = vsyncadd (!%p2241_p8), %s2067_s29, 4294967264  ;;  %p18_p5 = scmp.ge.s32.totalorder %s2456_s21, 4   ;;  %s3282_s15 = smov %s2387_s16 }
0x1d57   : > { %s3283_s16 = smov %s2391_s17  ;;  %s3284_s17 = smov %s2467_s24 }
0x1d58   : > { %s3285_s18 = smov %s2456_s21  ;;  %20 = sbr.rel (!%p18_p5) target bundleno = 5 (0x5), region = 84 }
0x1d5f   :  { %2072 = vsyncpa [#allocation3], 1 }
0x1d60   :  { %2074 = vsyncpa [#allocation3 + $0x1], 1 }
0x1d61   :  { %2075 = vsyncpa [#allocation5], 1 }
0x1d62   :  { %2077 = vsyncpa [#allocation5 + $0x1], 1 }

</bundles_post_ra>
